<compile_context>
chip_gen: v6e
topology: v6e:2x2x1
jax: 0.10.0
libtpu: 0.0.40
codegen_flags: <defaults>
</compile_context>

<pallas_src>
import functools

import jax
import jax.numpy as jnp
import numpy as np
from jax import lax
from jax.experimental import pallas as pl
from jax.experimental.pallas import tpu as pltpu


def _round_up(n, m):
    return ((n + m - 1) // m) * m


def _sigmoid_tanh(x):
    # One EUP transcendental per gate instead of exp + divide.
    return 0.5 * (jnp.tanh(0.5 * x) + 1.0)


def _tpu_vmem_and_cores():
    """Best-effort (VMEM bytes, tensorcores-per-chip); safe fallbacks."""
    vmem = 64 << 20
    cores = 1
    try:
        info = pltpu.get_tpu_info()
        v = getattr(info, "vmem_capacity_bytes", None)
        if v:
            vmem = int(v)
        for attr in ("num_tensorcores", "tensorcore_count", "num_cores",
                     "cores_per_chip"):
            c = getattr(info, attr, None)
            if c:
                cores = int(c)
                break
    except Exception:
        pass
    return vmem, cores


def _make_lstm_rec_kernel(t_total, t_chunk, unroll, guard):
    """Kernel factory closing over static time parameters."""

    def kernel(whh_t_ref, b_ref, h0_ref, c0_ref, out_ref, cN_ref, h_scr):
        tc = pl.program_id(1)

        # Initialize the carried state at the first time-chunk of each batch
        # block.  cN_ref (revisited output block) doubles as the c carry.
        @pl.when(tc == 0)
        def _():
            h_scr[...] = h0_ref[...]
            cN_ref[...] = c0_ref[...]

        tb, hp = h_scr.shape
        # Hoisted bias broadcast (JAX does not CSE broadcast_in_dim).
        bias = jnp.broadcast_to(b_ref[...], (tb, 4 * hp))

        def step(s, carry):
            h, c = carry
            # bf16 operands, f32 accumulate on the MXU.  Weight load stays in
            # the loop body (short live range; regalloc-friendly).
            gates = jnp.dot(h.astype(jnp.bfloat16), whh_t_ref[...],
                            preferred_element_type=jnp.float32) + bias
            # Gate order matches torch LSTMCell chunking: [i | f | g | o].
            i_g = _sigmoid_tanh(gates[:, 0 * hp:1 * hp])
            f_g = _sigmoid_tanh(gates[:, 1 * hp:2 * hp])
            g_g = jnp.tanh(gates[:, 2 * hp:3 * hp])
            o_g = _sigmoid_tanh(gates[:, 3 * hp:4 * hp])
            c_new = f_g * c + i_g * g_g
            h_new = o_g * jnp.tanh(c_new)
            out_ref[s] = h_new          # padded steps are sliced away outside
            if guard:
                # Freeze the recurrence on padded (>= T) steps so the final
                # state corresponds to step T-1.  Arithmetic blend (scalar
                # mul/add) keeps the lowering trivially supported.
                valid = (tc * t_chunk + s) < t_total
                m = jnp.where(valid, jnp.float32(1.0), jnp.float32(0.0))
                h_new = m * h_new + (1.0 - m) * h
                c_new = m * c_new + (1.0 - m) * c
            return (h_new, c_new)

        # h / c live in registers across the chunk; single VMEM read before
        # and single write after the loop.
        h_fin, c_fin = lax.fori_loop(0, t_chunk, step,
                                     (h_scr[...], cN_ref[...]),
                                     unroll=unroll)
        h_scr[...] = h_fin
        cN_ref[...] = c_fin

    return kernel


def lstm_inner_rec_layer(x, state, w_ih, w_hh, b_ih, b_hh):
    """Pallas forward of LSTMInnerRecLayer.

    x      : (T, B, I)  (only its length T matters: the cell always sees zeros)
    state  : (h0, c0), each (B, H) float32
    w_ih   : (4H, I)  -- unused (zero input), w_hh : (4H, H), b_ih/b_hh : (4H,)
    returns: (outputs (T, B, H), (hN (B, H), cN (B, H)))
    """
    del w_ih  # multiplies a guaranteed-zero input -> no contribution
    h0, c0 = state
    T = int(x.shape[0])
    B, H = h0.shape

    # ---- lane/sublane-aligned padded sizes --------------------------------
    Hp = _round_up(H, 128)           # lane-dense gate blocks and output slab
    Bp = _round_up(max(B, 1), 8)     # f32 sublane alignment

    # ---- per-gate weight layout: each gate block is lane-aligned ----------
    w_g = jnp.asarray(w_hh, jnp.float32).reshape(4, H, H)        # (gate, out, in)
    w_gt = jnp.transpose(w_g, (0, 2, 1))                         # (gate, in, out)
    w_gt = jnp.pad(w_gt, ((0, 0), (0, Hp - H), (0, Hp - H)))     # (4, Hp, Hp)
    whh_t = jnp.transpose(w_gt, (1, 0, 2)).reshape(Hp, 4 * Hp)   # (Hp, 4Hp)
    whh_t = whh_t.astype(jnp.bfloat16)                           # MXU-native weights

    bias_g = (jnp.asarray(b_ih, jnp.float32)
              + jnp.asarray(b_hh, jnp.float32)).reshape(4, H)
    bias = jnp.pad(bias_g, ((0, 0), (0, Hp - H))).reshape(1, 4 * Hp)

    h0p = jnp.pad(jnp.asarray(h0, jnp.float32), ((0, Bp - B), (0, Hp - H)))
    c0p = jnp.pad(jnp.asarray(c0, jnp.float32), ((0, Bp - B), (0, Hp - H)))

    # ---- chip-derived tiling parameters ------------------------------------
    vmem_cap, n_cores = _tpu_vmem_and_cores()

    # Batch split only pays off with >1 TensorCore (v7x megacore).  On
    # single-core v5e/v6e it would just rerun the sequential recurrence.
    split = n_cores if n_cores >= 2 else 1
    if split > 1 and Bp % (8 * split) == 0:
        TB = Bp // split
    else:
        TB = Bp
    n_b = Bp // TB

    # ---- timestep chunking: fixed large chunk, grid over padded T ----------
    bytes_per_step = TB * Hp * 4
    slab_cap = min(16 << 20, max(1 << 20, vmem_cap // 8))   # per-buffer slab
    target = max(16, min(128, slab_cap // bytes_per_step))
    T_CHUNK = min(T, target)
    n_chunks = (T + T_CHUNK - 1) // T_CHUNK
    T_pad = n_chunks * T_CHUNK
    guard = (T_pad != T)
    unroll = max(1, min(8, T_CHUNK))

    kernel = _make_lstm_rec_kernel(T, T_CHUNK, unroll, guard)

    # Weight block is loop-invariant; single-buffer it when large so it does
    # not eat VMEM twice (matters inside v7x's 64 MiB at big H).
    w_bytes = Hp * 4 * Hp * 2
    if w_bytes >= (8 << 20):
        w_spec = pl.BlockSpec((Hp, 4 * Hp), lambda b, t: (0, 0),
                              pipeline_mode=pl.Buffered(1))
        w_buf = 1
    else:
        w_spec = pl.BlockSpec((Hp, 4 * Hp), lambda b, t: (0, 0))
        w_buf = 2

    grid_spec = pltpu.PrefetchScalarGridSpec(
        num_scalar_prefetch=0,
        grid=(n_b, n_chunks),
        in_specs=[
            w_spec,                                                  # W_hh^T (bf16)
            pl.BlockSpec((1, 4 * Hp), lambda b, t: (0, 0)),          # combined bias
            pl.BlockSpec((TB, Hp), lambda b, t: (b, 0)),             # h0
            pl.BlockSpec((TB, Hp), lambda b, t: (b, 0)),             # c0
        ],
        out_specs=[
            pl.BlockSpec((T_CHUNK, TB, Hp), lambda b, t: (t, b, 0)),  # h slab
            pl.BlockSpec((TB, Hp), lambda b, t: (b, 0)),              # final c (carry)
        ],
        scratch_shapes=[
            pltpu.VMEM((TB, Hp), jnp.float32),                        # carried h
        ],
    )

    # VMEM budget: pipeline blocks + scratch, clamped well under the chip cap.
    vmem_bytes = (
        w_buf * w_bytes                  # W_hh^T bf16
        + 2 * (4 * Hp * 4)               # bias
        + 2 * 2 * (TB * Hp * 4)          # h0, c0
        + 2 * (T_CHUNK * TB * Hp * 4)    # output slab
        + 2 * (TB * Hp * 4)              # final c
        + (TB * Hp * 4)                  # h scratch
    )
    vmem_limit = int(min(int(0.8 * vmem_cap), max(32 << 20, 2 * vmem_bytes)))
    vmem_limit = max(vmem_limit, vmem_bytes + (4 << 20))

    outs_p, cN_p = pl.pallas_call(
        kernel,
        out_shape=(
            jax.ShapeDtypeStruct((T_pad, Bp, Hp), jnp.float32),
            jax.ShapeDtypeStruct((Bp, Hp), jnp.float32),
        ),
        grid_spec=grid_spec,
        compiler_params=pltpu.CompilerParams(
            dimension_semantics=("parallel", "arbitrary"),
            vmem_limit_bytes=vmem_limit,
        ),
    )(whh_t, bias, h0p, c0p)

    outs = outs_p[:T, :B, :H]
    cN = cN_p[:B, :H]
    hN = outs[-1]                         # h at step T-1 == final h
    return outs, (hN, cN)


def _reference(x, state, w_ih, w_hh, b_ih, b_hh):
    """Plain-JAX reference (torch LSTMCell fed zero inputs), matching the
    kernel's bf16-weight / f32-accumulate matmul numerics."""
    del w_ih
    h, c = state
    T = x.shape[0]
    H = h.shape[-1]
    w = jnp.asarray(w_hh, jnp.float32).T.astype(jnp.bfloat16)    # (H, 4H)
    bias = jnp.asarray(b_ih, jnp.float32) + jnp.asarray(b_hh, jnp.float32)
    outs = []
    for _ in range(T):
        gates = jnp.dot(h.astype(jnp.bfloat16), w,
                        preferred_element_type=jnp.float32) + bias
        i_g = jax.nn.sigmoid(gates[:, :H])
        f_g = jax.nn.sigmoid(gates[:, H:2 * H])
        g_g = jnp.tanh(gates[:, 2 * H:3 * H])
        o_g = jax.nn.sigmoid(gates[:, 3 * H:])
        c = f_g * c + i_g * g_g
        h = o_g * jnp.tanh(c)
        outs.append(h)
    return jnp.stack(outs), (h, c)


if __name__ == "__main__":
    T, B, I, H = 8, 2, 16, 32

    key = jax.random.PRNGKey(0)
    kx, kh, kc, k1, k2, k3, k4 = jax.random.split(key, 7)

    x = jax.random.normal(kx, (T, B, I), dtype=jnp.float32)
    h0 = jax.random.normal(kh, (B, H), dtype=jnp.float32)
    c0 = jax.random.normal(kc, (B, H), dtype=jnp.float32)

    # Deterministic synthetic cell parameters (torch.nn.LSTMCell shapes).
    scale = 1.0 / np.sqrt(H)
    w_ih = jax.random.uniform(k1, (4 * H, I), jnp.float32, -scale, scale)
    w_hh = jax.random.uniform(k2, (4 * H, H), jnp.float32, -scale, scale)
    b_ih = jax.random.uniform(k3, (4 * H,), jnp.float32, -scale, scale)
    b_hh = jax.random.uniform(k4, (4 * H,), jnp.float32, -scale, scale)

    outs, (hN, cN) = lstm_inner_rec_layer(x, (h0, c0), w_ih, w_hh, b_ih, b_hh)
    jax.block_until_ready((outs, hN, cN))

    ref_outs, (ref_h, ref_c) = _reference(x, (h0, c0), w_ih, w_hh, b_ih, b_hh)
    np.testing.assert_allclose(np.asarray(outs), np.asarray(ref_outs), rtol=5e-3, atol=5e-3)
    np.testing.assert_allclose(np.asarray(hN), np.asarray(ref_h), rtol=5e-3, atol=5e-3)
    np.testing.assert_allclose(np.asarray(cN), np.asarray(ref_c), rtol=5e-3, atol=5e-3)

    print("KERNEL_OK")
</pallas_src>

<mosaic_0001>
module attributes {stable_mosaic.version = 11 : i64} {
  func.func @kernel(%arg0: i32, %arg1: i32, %arg2: memref<128x512xbf16, #tpu.memory_space<vmem>>, %arg3: memref<1x512xf32, #tpu.memory_space<vmem>>, %arg4: memref<8x128xf32, #tpu.memory_space<vmem>>, %arg5: memref<8x128xf32, #tpu.memory_space<vmem>>, %arg6: memref<8x8x128xf32, #tpu.memory_space<vmem>>, %arg7: memref<8x128xf32, #tpu.memory_space<vmem>>, %arg8: memref<8x128xf32, #tpu.memory_space<vmem>>) attributes {dimension_semantics = [#tpu.dimension_semantics<parallel>, #tpu.dimension_semantics<arbitrary>], iteration_bounds = array<i64: 1, 1>, scalar_prefetch = 0 : i64, scratch_operands = 1 : i64, tpu.core_type = #tpu.core_type<tc>, window_params = [{pipeline_mode = #tpu.pipeline_mode<synchronous>, transform_indices = @transform_0, window_bounds = array<i64: 128, 512>}, {pipeline_mode = #tpu.pipeline_mode<synchronous>, transform_indices = @transform_1, window_bounds = array<i64: 1, 512>}, {transform_indices = @transform_2, window_bounds = array<i64: 8, 128>}, {transform_indices = @transform_3, window_bounds = array<i64: 8, 128>}, {transform_indices = @transform_4, window_bounds = array<i64: 8, 8, 128>}, {transform_indices = @transform_5, window_bounds = array<i64: 8, 128>}]} {
    %c0_i32 = arith.constant 0 : i32
    %0 = arith.cmpi eq, %arg1, %c0_i32 : i32
    %1 = arith.extui %0 : i1 to i32
    %c0_i32_0 = arith.constant 0 : i32
    %2 = arith.cmpi ne, %1, %c0_i32_0 : i32
    scf.if %2 {
      %c0_122 = arith.constant 0 : index
      %c0_123 = arith.constant 0 : index
      %322 = vector.load %arg4[%c0_122, %c0_123] : memref<8x128xf32, #tpu.memory_space<vmem>>, vector<8x128xf32>
      %c0_124 = arith.constant 0 : index
      %c0_125 = arith.constant 0 : index
      %323 = vector.load %arg8[%c0_124, %c0_125] : memref<8x128xf32, #tpu.memory_space<vmem>>, vector<8x128xf32>
      tpu.vector_store %arg8[%c0_124, %c0_125], %322 {strides = array<i32>} : memref<8x128xf32, #tpu.memory_space<vmem>>, vector<8x128xf32>,
      %c0_126 = arith.constant 0 : index
      %c0_127 = arith.constant 0 : index
      %324 = vector.load %arg5[%c0_126, %c0_127] : memref<8x128xf32, #tpu.memory_space<vmem>>, vector<8x128xf32>
      %c0_128 = arith.constant 0 : index
      %c0_129 = arith.constant 0 : index
      %325 = vector.load %arg7[%c0_128, %c0_129] : memref<8x128xf32, #tpu.memory_space<vmem>>, vector<8x128xf32>
      tpu.vector_store %arg7[%c0_128, %c0_129], %324 {strides = array<i32>} : memref<8x128xf32, #tpu.memory_space<vmem>>, vector<8x128xf32>,
    } else {
    }
    %c0 = arith.constant 0 : index
    %c0_1 = arith.constant 0 : index
    %3 = vector.load %arg3[%c0, %c0_1] : memref<1x512xf32, #tpu.memory_space<vmem>>, vector<1x512xf32>
    %4 = vector.shape_cast %3 : vector<1x512xf32> to vector<1x512xf32>
    %5 = vector.broadcast %4 : vector<1x512xf32> to vector<8x512xf32>
    %c0_2 = arith.constant 0 : index
    %c0_3 = arith.constant 0 : index
    %6 = vector.load %arg8[%c0_2, %c0_3] : memref<8x128xf32, #tpu.memory_space<vmem>>, vector<8x128xf32>
    %c0_4 = arith.constant 0 : index
    %c0_5 = arith.constant 0 : index
    %7 = vector.load %arg7[%c0_4, %c0_5] : memref<8x128xf32, #tpu.memory_space<vmem>>, vector<8x128xf32>
    %c0_i32_6 = arith.constant 0 : i32
    %8 = arith.truncf %6 : vector<8x128xf32> to vector<8x128xbf16>
    %c0_7 = arith.constant 0 : index
    %c0_8 = arith.constant 0 : index
    %9 = vector.load %arg2[%c0_7, %c0_8] : memref<128x512xbf16, #tpu.memory_space<vmem>>, vector<128x512xbf16>
    %cst = arith.constant dense<0.000000e+00> : vector<8x512xf32>
    %10 = tpu.matmul %8, %9, %cst {dimension_numbers = #tpu.dot_dimension_numbers<[1], [0], [0], [1], [0, 0, 1, 1], [], []>} : vector<8x128xbf16>, vector<128x512xbf16>, vector<8x512xf32> -> vector<8x512xf32>
    %11 = arith.addf %10, %5 : vector<8x512xf32>
    %12 = vector.extract_strided_slice %11 {offsets = [0, 0], sizes = [8, 128], strides = [1, 1]} : vector<8x512xf32> to vector<8x128xf32>
    %cst_9 = arith.constant 5.000000e-01 : f32
    %13 = vector.broadcast %cst_9 : f32 to vector<8x128xf32>
    %14 = arith.mulf %13, %12 : vector<8x128xf32>
    %15 = math.tanh %14 : vector<8x128xf32>
    %cst_10 = arith.constant 1.000000e+00 : f32
    %16 = vector.broadcast %cst_10 : f32 to vector<8x128xf32>
    %17 = arith.addf %15, %16 : vector<8x128xf32>
    %cst_11 = arith.constant 5.000000e-01 : f32
    %18 = vector.broadcast %cst_11 : f32 to vector<8x128xf32>
    %19 = arith.mulf %18, %17 : vector<8x128xf32>
    %20 = vector.extract_strided_slice %11 {offsets = [0, 128], sizes = [8, 128], strides = [1, 1]} : vector<8x512xf32> to vector<8x128xf32>
    %cst_12 = arith.constant 5.000000e-01 : f32
    %21 = vector.broadcast %cst_12 : f32 to vector<8x128xf32>
    %22 = arith.mulf %21, %20 : vector<8x128xf32>
    %23 = math.tanh %22 : vector<8x128xf32>
    %cst_13 = arith.constant 1.000000e+00 : f32
    %24 = vector.broadcast %cst_13 : f32 to vector<8x128xf32>
    %25 = arith.addf %23, %24 : vector<8x128xf32>
    %cst_14 = arith.constant 5.000000e-01 : f32
    %26 = vector.broadcast %cst_14 : f32 to vector<8x128xf32>
    %27 = arith.mulf %26, %25 : vector<8x128xf32>
    %28 = vector.extract_strided_slice %11 {offsets = [0, 256], sizes = [8, 128], strides = [1, 1]} : vector<8x512xf32> to vector<8x128xf32>
    %29 = math.tanh %28 : vector<8x128xf32>
    %30 = vector.extract_strided_slice %11 {offsets = [0, 384], sizes = [8, 128], strides = [1, 1]} : vector<8x512xf32> to vector<8x128xf32>
    %cst_15 = arith.constant 5.000000e-01 : f32
    %31 = vector.broadcast %cst_15 : f32 to vector<8x128xf32>
    %32 = arith.mulf %31, %30 : vector<8x128xf32>
    %33 = math.tanh %32 : vector<8x128xf32>
    %cst_16 = arith.constant 1.000000e+00 : f32
    %34 = vector.broadcast %cst_16 : f32 to vector<8x128xf32>
    %35 = arith.addf %33, %34 : vector<8x128xf32>
    %cst_17 = arith.constant 5.000000e-01 : f32
    %36 = vector.broadcast %cst_17 : f32 to vector<8x128xf32>
    %37 = arith.mulf %36, %35 : vector<8x128xf32>
    %38 = arith.mulf %27, %7 : vector<8x128xf32>
    %39 = arith.mulf %19, %29 : vector<8x128xf32>
    %40 = arith.addf %38, %39 : vector<8x128xf32>
    %41 = math.tanh %40 : vector<8x128xf32>
    %42 = arith.mulf %37, %41 : vector<8x128xf32>
    %43 = arith.index_cast %c0_i32_6 : i32 to index
    %c0_18 = arith.constant 0 : index
    %c0_19 = arith.constant 0 : index
    %44 = vector.load %arg6[%43, %c0_18, %c0_19] : memref<8x8x128xf32, #tpu.memory_space<vmem>>, vector<1x8x128xf32>
    %45 = vector.shape_cast %44 : vector<1x8x128xf32> to vector<8x128xf32>
    %46 = vector.shape_cast %42 : vector<8x128xf32> to vector<1x8x128xf32>
    tpu.vector_store %arg6[%43, %c0_18, %c0_19], %46 {strides = array<i32>} : memref<8x8x128xf32, #tpu.memory_space<vmem>>, vector<1x8x128xf32>,
    %c1_i32 = arith.constant 1 : i32
    %47 = arith.truncf %42 : vector<8x128xf32> to vector<8x128xbf16>
    %c0_20 = arith.constant 0 : index
    %c0_21 = arith.constant 0 : index
    %48 = vector.load %arg2[%c0_20, %c0_21] : memref<128x512xbf16, #tpu.memory_space<vmem>>, vector<128x512xbf16>
    %cst_22 = arith.constant dense<0.000000e+00> : vector<8x512xf32>
    %49 = tpu.matmul %47, %48, %cst_22 {dimension_numbers = #tpu.dot_dimension_numbers<[1], [0], [0], [1], [0, 0, 1, 1], [], []>} : vector<8x128xbf16>, vector<128x512xbf16>, vector<8x512xf32> -> vector<8x512xf32>
    %50 = arith.addf %49, %5 : vector<8x512xf32>
    %51 = vector.extract_strided_slice %50 {offsets = [0, 0], sizes = [8, 128], strides = [1, 1]} : vector<8x512xf32> to vector<8x128xf32>
    %cst_23 = arith.constant 5.000000e-01 : f32
    %52 = vector.broadcast %cst_23 : f32 to vector<8x128xf32>
    %53 = arith.mulf %52, %51 : vector<8x128xf32>
    %54 = math.tanh %53 : vector<8x128xf32>
    %cst_24 = arith.constant 1.000000e+00 : f32
    %55 = vector.broadcast %cst_24 : f32 to vector<8x128xf32>
    %56 = arith.addf %54, %55 : vector<8x128xf32>
    %cst_25 = arith.constant 5.000000e-01 : f32
    %57 = vector.broadcast %cst_25 : f32 to vector<8x128xf32>
    %58 = arith.mulf %57, %56 : vector<8x128xf32>
    %59 = vector.extract_strided_slice %50 {offsets = [0, 128], sizes = [8, 128], strides = [1, 1]} : vector<8x512xf32> to vector<8x128xf32>
    %cst_26 = arith.constant 5.000000e-01 : f32
    %60 = vector.broadcast %cst_26 : f32 to vector<8x128xf32>
    %61 = arith.mulf %60, %59 : vector<8x128xf32>
    %62 = math.tanh %61 : vector<8x128xf32>
    %cst_27 = arith.constant 1.000000e+00 : f32
    %63 = vector.broadcast %cst_27 : f32 to vector<8x128xf32>
    %64 = arith.addf %62, %63 : vector<8x128xf32>
    %cst_28 = arith.constant 5.000000e-01 : f32
    %65 = vector.broadcast %cst_28 : f32 to vector<8x128xf32>
    %66 = arith.mulf %65, %64 : vector<8x128xf32>
    %67 = vector.extract_strided_slice %50 {offsets = [0, 256], sizes = [8, 128], strides = [1, 1]} : vector<8x512xf32> to vector<8x128xf32>
    %68 = math.tanh %67 : vector<8x128xf32>
    %69 = vector.extract_strided_slice %50 {offsets = [0, 384], sizes = [8, 128], strides = [1, 1]} : vector<8x512xf32> to vector<8x128xf32>
    %cst_29 = arith.constant 5.000000e-01 : f32
    %70 = vector.broadcast %cst_29 : f32 to vector<8x128xf32>
    %71 = arith.mulf %70, %69 : vector<8x128xf32>
    %72 = math.tanh %71 : vector<8x128xf32>
    %cst_30 = arith.constant 1.000000e+00 : f32
    %73 = vector.broadcast %cst_30 : f32 to vector<8x128xf32>
    %74 = arith.addf %72, %73 : vector<8x128xf32>
    %cst_31 = arith.constant 5.000000e-01 : f32
    %75 = vector.broadcast %cst_31 : f32 to vector<8x128xf32>
    %76 = arith.mulf %75, %74 : vector<8x128xf32>
    %77 = arith.mulf %66, %40 : vector<8x128xf32>
    %78 = arith.mulf %58, %68 : vector<8x128xf32>
    %79 = arith.addf %77, %78 : vector<8x128xf32>
    %80 = math.tanh %79 : vector<8x128xf32>
    %81 = arith.mulf %76, %80 : vector<8x128xf32>
    %82 = arith.index_cast %c1_i32 : i32 to index
    %c0_32 = arith.constant 0 : index
    %c0_33 = arith.constant 0 : index
    %83 = vector.load %arg6[%82, %c0_32, %c0_33] : memref<8x8x128xf32, #tpu.memory_space<vmem>>, vector<1x8x128xf32>
    %84 = vector.shape_cast %83 : vector<1x8x128xf32> to vector<8x128xf32>
    %85 = vector.shape_cast %81 : vector<8x128xf32> to vector<1x8x128xf32>
    tpu.vector_store %arg6[%82, %c0_32, %c0_33], %85 {strides = array<i32>} : memref<8x8x128xf32, #tpu.memory_space<vmem>>, vector<1x8x128xf32>,
    %c2_i32 = arith.constant 2 : i32
    %86 = arith.truncf %81 : vector<8x128xf32> to vector<8x128xbf16>
    %c0_34 = arith.constant 0 : index
    %c0_35 = arith.constant 0 : index
    %87 = vector.load %arg2[%c0_34, %c0_35] : memref<128x512xbf16, #tpu.memory_space<vmem>>, vector<128x512xbf16>
    %cst_36 = arith.constant dense<0.000000e+00> : vector<8x512xf32>
    %88 = tpu.matmul %86, %87, %cst_36 {dimension_numbers = #tpu.dot_dimension_numbers<[1], [0], [0], [1], [0, 0, 1, 1], [], []>} : vector<8x128xbf16>, vector<128x512xbf16>, vector<8x512xf32> -> vector<8x512xf32>
    %89 = arith.addf %88, %5 : vector<8x512xf32>
    %90 = vector.extract_strided_slice %89 {offsets = [0, 0], sizes = [8, 128], strides = [1, 1]} : vector<8x512xf32> to vector<8x128xf32>
    %cst_37 = arith.constant 5.000000e-01 : f32
    %91 = vector.broadcast %cst_37 : f32 to vector<8x128xf32>
    %92 = arith.mulf %91, %90 : vector<8x128xf32>
    %93 = math.tanh %92 : vector<8x128xf32>
    %cst_38 = arith.constant 1.000000e+00 : f32
    %94 = vector.broadcast %cst_38 : f32 to vector<8x128xf32>
    %95 = arith.addf %93, %94 : vector<8x128xf32>
    %cst_39 = arith.constant 5.000000e-01 : f32
    %96 = vector.broadcast %cst_39 : f32 to vector<8x128xf32>
    %97 = arith.mulf %96, %95 : vector<8x128xf32>
    %98 = vector.extract_strided_slice %89 {offsets = [0, 128], sizes = [8, 128], strides = [1, 1]} : vector<8x512xf32> to vector<8x128xf32>
    %cst_40 = arith.constant 5.000000e-01 : f32
    %99 = vector.broadcast %cst_40 : f32 to vector<8x128xf32>
    %100 = arith.mulf %99, %98 : vector<8x128xf32>
    %101 = math.tanh %100 : vector<8x128xf32>
    %cst_41 = arith.constant 1.000000e+00 : f32
    %102 = vector.broadcast %cst_41 : f32 to vector<8x128xf32>
    %103 = arith.addf %101, %102 : vector<8x128xf32>
    %cst_42 = arith.constant 5.000000e-01 : f32
    %104 = vector.broadcast %cst_42 : f32 to vector<8x128xf32>
    %105 = arith.mulf %104, %103 : vector<8x128xf32>
    %106 = vector.extract_strided_slice %89 {offsets = [0, 256], sizes = [8, 128], strides = [1, 1]} : vector<8x512xf32> to vector<8x128xf32>
    %107 = math.tanh %106 : vector<8x128xf32>
    %108 = vector.extract_strided_slice %89 {offsets = [0, 384], sizes = [8, 128], strides = [1, 1]} : vector<8x512xf32> to vector<8x128xf32>
    %cst_43 = arith.constant 5.000000e-01 : f32
    %109 = vector.broadcast %cst_43 : f32 to vector<8x128xf32>
    %110 = arith.mulf %109, %108 : vector<8x128xf32>
    %111 = math.tanh %110 : vector<8x128xf32>
    %cst_44 = arith.constant 1.000000e+00 : f32
    %112 = vector.broadcast %cst_44 : f32 to vector<8x128xf32>
    %113 = arith.addf %111, %112 : vector<8x128xf32>
    %cst_45 = arith.constant 5.000000e-01 : f32
    %114 = vector.broadcast %cst_45 : f32 to vector<8x128xf32>
    %115 = arith.mulf %114, %113 : vector<8x128xf32>
    %116 = arith.mulf %105, %79 : vector<8x128xf32>
    %117 = arith.mulf %97, %107 : vector<8x128xf32>
    %118 = arith.addf %116, %117 : vector<8x128xf32>
    %119 = math.tanh %118 : vector<8x128xf32>
    %120 = arith.mulf %115, %119 : vector<8x128xf32>
    %121 = arith.index_cast %c2_i32 : i32 to index
    %c0_46 = arith.constant 0 : index
    %c0_47 = arith.constant 0 : index
    %122 = vector.load %arg6[%121, %c0_46, %c0_47] : memref<8x8x128xf32, #tpu.memory_space<vmem>>, vector<1x8x128xf32>
    %123 = vector.shape_cast %122 : vector<1x8x128xf32> to vector<8x128xf32>
    %124 = vector.shape_cast %120 : vector<8x128xf32> to vector<1x8x128xf32>
    tpu.vector_store %arg6[%121, %c0_46, %c0_47], %124 {strides = array<i32>} : memref<8x8x128xf32, #tpu.memory_space<vmem>>, vector<1x8x128xf32>,
    %c3_i32 = arith.constant 3 : i32
    %125 = arith.truncf %120 : vector<8x128xf32> to vector<8x128xbf16>
    %c0_48 = arith.constant 0 : index
    %c0_49 = arith.constant 0 : index
    %126 = vector.load %arg2[%c0_48, %c0_49] : memref<128x512xbf16, #tpu.memory_space<vmem>>, vector<128x512xbf16>
    %cst_50 = arith.constant dense<0.000000e+00> : vector<8x512xf32>
    %127 = tpu.matmul %125, %126, %cst_50 {dimension_numbers = #tpu.dot_dimension_numbers<[1], [0], [0], [1], [0, 0, 1, 1], [], []>} : vector<8x128xbf16>, vector<128x512xbf16>, vector<8x512xf32> -> vector<8x512xf32>
    %128 = arith.addf %127, %5 : vector<8x512xf32>
    %129 = vector.extract_strided_slice %128 {offsets = [0, 0], sizes = [8, 128], strides = [1, 1]} : vector<8x512xf32> to vector<8x128xf32>
    %cst_51 = arith.constant 5.000000e-01 : f32
    %130 = vector.broadcast %cst_51 : f32 to vector<8x128xf32>
    %131 = arith.mulf %130, %129 : vector<8x128xf32>
    %132 = math.tanh %131 : vector<8x128xf32>
    %cst_52 = arith.constant 1.000000e+00 : f32
    %133 = vector.broadcast %cst_52 : f32 to vector<8x128xf32>
    %134 = arith.addf %132, %133 : vector<8x128xf32>
    %cst_53 = arith.constant 5.000000e-01 : f32
    %135 = vector.broadcast %cst_53 : f32 to vector<8x128xf32>
    %136 = arith.mulf %135, %134 : vector<8x128xf32>
    %137 = vector.extract_strided_slice %128 {offsets = [0, 128], sizes = [8, 128], strides = [1, 1]} : vector<8x512xf32> to vector<8x128xf32>
    %cst_54 = arith.constant 5.000000e-01 : f32
    %138 = vector.broadcast %cst_54 : f32 to vector<8x128xf32>
    %139 = arith.mulf %138, %137 : vector<8x128xf32>
    %140 = math.tanh %139 : vector<8x128xf32>
    %cst_55 = arith.constant 1.000000e+00 : f32
    %141 = vector.broadcast %cst_55 : f32 to vector<8x128xf32>
    %142 = arith.addf %140, %141 : vector<8x128xf32>
    %cst_56 = arith.constant 5.000000e-01 : f32
    %143 = vector.broadcast %cst_56 : f32 to vector<8x128xf32>
    %144 = arith.mulf %143, %142 : vector<8x128xf32>
    %145 = vector.extract_strided_slice %128 {offsets = [0, 256], sizes = [8, 128], strides = [1, 1]} : vector<8x512xf32> to vector<8x128xf32>
    %146 = math.tanh %145 : vector<8x128xf32>
    %147 = vector.extract_strided_slice %128 {offsets = [0, 384], sizes = [8, 128], strides = [1, 1]} : vector<8x512xf32> to vector<8x128xf32>
    %cst_57 = arith.constant 5.000000e-01 : f32
    %148 = vector.broadcast %cst_57 : f32 to vector<8x128xf32>
    %149 = arith.mulf %148, %147 : vector<8x128xf32>
    %150 = math.tanh %149 : vector<8x128xf32>
    %cst_58 = arith.constant 1.000000e+00 : f32
    %151 = vector.broadcast %cst_58 : f32 to vector<8x128xf32>
    %152 = arith.addf %150, %151 : vector<8x128xf32>
    %cst_59 = arith.constant 5.000000e-01 : f32
    %153 = vector.broadcast %cst_59 : f32 to vector<8x128xf32>
    %154 = arith.mulf %153, %152 : vector<8x128xf32>
    %155 = arith.mulf %144, %118 : vector<8x128xf32>
    %156 = arith.mulf %136, %146 : vector<8x128xf32>
    %157 = arith.addf %155, %156 : vector<8x128xf32>
    %158 = math.tanh %157 : vector<8x128xf32>
    %159 = arith.mulf %154, %158 : vector<8x128xf32>
    %160 = arith.index_cast %c3_i32 : i32 to index
    %c0_60 = arith.constant 0 : index
    %c0_61 = arith.constant 0 : index
    %161 = vector.load %arg6[%160, %c0_60, %c0_61] : memref<8x8x128xf32, #tpu.memory_space<vmem>>, vector<1x8x128xf32>
    %162 = vector.shape_cast %161 : vector<1x8x128xf32> to vector<8x128xf32>
    %163 = vector.shape_cast %159 : vector<8x128xf32> to vector<1x8x128xf32>
    tpu.vector_store %arg6[%160, %c0_60, %c0_61], %163 {strides = array<i32>} : memref<8x8x128xf32, #tpu.memory_space<vmem>>, vector<1x8x128xf32>,
    %c4_i32 = arith.constant 4 : i32
    %164 = arith.truncf %159 : vector<8x128xf32> to vector<8x128xbf16>
    %c0_62 = arith.constant 0 : index
    %c0_63 = arith.constant 0 : index
    %165 = vector.load %arg2[%c0_62, %c0_63] : memref<128x512xbf16, #tpu.memory_space<vmem>>, vector<128x512xbf16>
    %cst_64 = arith.constant dense<0.000000e+00> : vector<8x512xf32>
    %166 = tpu.matmul %164, %165, %cst_64 {dimension_numbers = #tpu.dot_dimension_numbers<[1], [0], [0], [1], [0, 0, 1, 1], [], []>} : vector<8x128xbf16>, vector<128x512xbf16>, vector<8x512xf32> -> vector<8x512xf32>
    %167 = arith.addf %166, %5 : vector<8x512xf32>
    %168 = vector.extract_strided_slice %167 {offsets = [0, 0], sizes = [8, 128], strides = [1, 1]} : vector<8x512xf32> to vector<8x128xf32>
    %cst_65 = arith.constant 5.000000e-01 : f32
    %169 = vector.broadcast %cst_65 : f32 to vector<8x128xf32>
    %170 = arith.mulf %169, %168 : vector<8x128xf32>
    %171 = math.tanh %170 : vector<8x128xf32>
    %cst_66 = arith.constant 1.000000e+00 : f32
    %172 = vector.broadcast %cst_66 : f32 to vector<8x128xf32>
    %173 = arith.addf %171, %172 : vector<8x128xf32>
    %cst_67 = arith.constant 5.000000e-01 : f32
    %174 = vector.broadcast %cst_67 : f32 to vector<8x128xf32>
    %175 = arith.mulf %174, %173 : vector<8x128xf32>
    %176 = vector.extract_strided_slice %167 {offsets = [0, 128], sizes = [8, 128], strides = [1, 1]} : vector<8x512xf32> to vector<8x128xf32>
    %cst_68 = arith.constant 5.000000e-01 : f32
    %177 = vector.broadcast %cst_68 : f32 to vector<8x128xf32>
    %178 = arith.mulf %177, %176 : vector<8x128xf32>
    %179 = math.tanh %178 : vector<8x128xf32>
    %cst_69 = arith.constant 1.000000e+00 : f32
    %180 = vector.broadcast %cst_69 : f32 to vector<8x128xf32>
    %181 = arith.addf %179, %180 : vector<8x128xf32>
    %cst_70 = arith.constant 5.000000e-01 : f32
    %182 = vector.broadcast %cst_70 : f32 to vector<8x128xf32>
    %183 = arith.mulf %182, %181 : vector<8x128xf32>
    %184 = vector.extract_strided_slice %167 {offsets = [0, 256], sizes = [8, 128], strides = [1, 1]} : vector<8x512xf32> to vector<8x128xf32>
    %185 = math.tanh %184 : vector<8x128xf32>
    %186 = vector.extract_strided_slice %167 {offsets = [0, 384], sizes = [8, 128], strides = [1, 1]} : vector<8x512xf32> to vector<8x128xf32>
    %cst_71 = arith.constant 5.000000e-01 : f32
    %187 = vector.broadcast %cst_71 : f32 to vector<8x128xf32>
    %188 = arith.mulf %187, %186 : vector<8x128xf32>
    %189 = math.tanh %188 : vector<8x128xf32>
    %cst_72 = arith.constant 1.000000e+00 : f32
    %190 = vector.broadcast %cst_72 : f32 to vector<8x128xf32>
    %191 = arith.addf %189, %190 : vector<8x128xf32>
    %cst_73 = arith.constant 5.000000e-01 : f32
    %192 = vector.broadcast %cst_73 : f32 to vector<8x128xf32>
    %193 = arith.mulf %192, %191 : vector<8x128xf32>
    %194 = arith.mulf %183, %157 : vector<8x128xf32>
    %195 = arith.mulf %175, %185 : vector<8x128xf32>
    %196 = arith.addf %194, %195 : vector<8x128xf32>
    %197 = math.tanh %196 : vector<8x128xf32>
    %198 = arith.mulf %193, %197 : vector<8x128xf32>
    %199 = arith.index_cast %c4_i32 : i32 to index
    %c0_74 = arith.constant 0 : index
    %c0_75 = arith.constant 0 : index
    %200 = vector.load %arg6[%199, %c0_74, %c0_75] : memref<8x8x128xf32, #tpu.memory_space<vmem>>, vector<1x8x128xf32>
    %201 = vector.shape_cast %200 : vector<1x8x128xf32> to vector<8x128xf32>
    %202 = vector.shape_cast %198 : vector<8x128xf32> to vector<1x8x128xf32>
    tpu.vector_store %arg6[%199, %c0_74, %c0_75], %202 {strides = array<i32>} : memref<8x8x128xf32, #tpu.memory_space<vmem>>, vector<1x8x128xf32>,
    %c5_i32 = arith.constant 5 : i32
    %203 = arith.truncf %198 : vector<8x128xf32> to vector<8x128xbf16>
    %c0_76 = arith.constant 0 : index
    %c0_77 = arith.constant 0 : index
    %204 = vector.load %arg2[%c0_76, %c0_77] : memref<128x512xbf16, #tpu.memory_space<vmem>>, vector<128x512xbf16>
    %cst_78 = arith.constant dense<0.000000e+00> : vector<8x512xf32>
    %205 = tpu.matmul %203, %204, %cst_78 {dimension_numbers = #tpu.dot_dimension_numbers<[1], [0], [0], [1], [0, 0, 1, 1], [], []>} : vector<8x128xbf16>, vector<128x512xbf16>, vector<8x512xf32> -> vector<8x512xf32>
    %206 = arith.addf %205, %5 : vector<8x512xf32>
    %207 = vector.extract_strided_slice %206 {offsets = [0, 0], sizes = [8, 128], strides = [1, 1]} : vector<8x512xf32> to vector<8x128xf32>
    %cst_79 = arith.constant 5.000000e-01 : f32
    %208 = vector.broadcast %cst_79 : f32 to vector<8x128xf32>
    %209 = arith.mulf %208, %207 : vector<8x128xf32>
    %210 = math.tanh %209 : vector<8x128xf32>
    %cst_80 = arith.constant 1.000000e+00 : f32
    %211 = vector.broadcast %cst_80 : f32 to vector<8x128xf32>
    %212 = arith.addf %210, %211 : vector<8x128xf32>
    %cst_81 = arith.constant 5.000000e-01 : f32
    %213 = vector.broadcast %cst_81 : f32 to vector<8x128xf32>
    %214 = arith.mulf %213, %212 : vector<8x128xf32>
    %215 = vector.extract_strided_slice %206 {offsets = [0, 128], sizes = [8, 128], strides = [1, 1]} : vector<8x512xf32> to vector<8x128xf32>
    %cst_82 = arith.constant 5.000000e-01 : f32
    %216 = vector.broadcast %cst_82 : f32 to vector<8x128xf32>
    %217 = arith.mulf %216, %215 : vector<8x128xf32>
    %218 = math.tanh %217 : vector<8x128xf32>
    %cst_83 = arith.constant 1.000000e+00 : f32
    %219 = vector.broadcast %cst_83 : f32 to vector<8x128xf32>
    %220 = arith.addf %218, %219 : vector<8x128xf32>
    %cst_84 = arith.constant 5.000000e-01 : f32
    %221 = vector.broadcast %cst_84 : f32 to vector<8x128xf32>
    %222 = arith.mulf %221, %220 : vector<8x128xf32>
    %223 = vector.extract_strided_slice %206 {offsets = [0, 256], sizes = [8, 128], strides = [1, 1]} : vector<8x512xf32> to vector<8x128xf32>
    %224 = math.tanh %223 : vector<8x128xf32>
    %225 = vector.extract_strided_slice %206 {offsets = [0, 384], sizes = [8, 128], strides = [1, 1]} : vector<8x512xf32> to vector<8x128xf32>
    %cst_85 = arith.constant 5.000000e-01 : f32
    %226 = vector.broadcast %cst_85 : f32 to vector<8x128xf32>
    %227 = arith.mulf %226, %225 : vector<8x128xf32>
    %228 = math.tanh %227 : vector<8x128xf32>
    %cst_86 = arith.constant 1.000000e+00 : f32
    %229 = vector.broadcast %cst_86 : f32 to vector<8x128xf32>
    %230 = arith.addf %228, %229 : vector<8x128xf32>
    %cst_87 = arith.constant 5.000000e-01 : f32
    %231 = vector.broadcast %cst_87 : f32 to vector<8x128xf32>
    %232 = arith.mulf %231, %230 : vector<8x128xf32>
    %233 = arith.mulf %222, %196 : vector<8x128xf32>
    %234 = arith.mulf %214, %224 : vector<8x128xf32>
    %235 = arith.addf %233, %234 : vector<8x128xf32>
    %236 = math.tanh %235 : vector<8x128xf32>
    %237 = arith.mulf %232, %236 : vector<8x128xf32>
    %238 = arith.index_cast %c5_i32 : i32 to index
    %c0_88 = arith.constant 0 : index
    %c0_89 = arith.constant 0 : index
    %239 = vector.load %arg6[%238, %c0_88, %c0_89] : memref<8x8x128xf32, #tpu.memory_space<vmem>>, vector<1x8x128xf32>
    %240 = vector.shape_cast %239 : vector<1x8x128xf32> to vector<8x128xf32>
    %241 = vector.shape_cast %237 : vector<8x128xf32> to vector<1x8x128xf32>
    tpu.vector_store %arg6[%238, %c0_88, %c0_89], %241 {strides = array<i32>} : memref<8x8x128xf32, #tpu.memory_space<vmem>>, vector<1x8x128xf32>,
    %c6_i32 = arith.constant 6 : i32
    %242 = arith.truncf %237 : vector<8x128xf32> to vector<8x128xbf16>
    %c0_90 = arith.constant 0 : index
    %c0_91 = arith.constant 0 : index
    %243 = vector.load %arg2[%c0_90, %c0_91] : memref<128x512xbf16, #tpu.memory_space<vmem>>, vector<128x512xbf16>
    %cst_92 = arith.constant dense<0.000000e+00> : vector<8x512xf32>
    %244 = tpu.matmul %242, %243, %cst_92 {dimension_numbers = #tpu.dot_dimension_numbers<[1], [0], [0], [1], [0, 0, 1, 1], [], []>} : vector<8x128xbf16>, vector<128x512xbf16>, vector<8x512xf32> -> vector<8x512xf32>
    %245 = arith.addf %244, %5 : vector<8x512xf32>
    %246 = vector.extract_strided_slice %245 {offsets = [0, 0], sizes = [8, 128], strides = [1, 1]} : vector<8x512xf32> to vector<8x128xf32>
    %cst_93 = arith.constant 5.000000e-01 : f32
    %247 = vector.broadcast %cst_93 : f32 to vector<8x128xf32>
    %248 = arith.mulf %247, %246 : vector<8x128xf32>
    %249 = math.tanh %248 : vector<8x128xf32>
    %cst_94 = arith.constant 1.000000e+00 : f32
    %250 = vector.broadcast %cst_94 : f32 to vector<8x128xf32>
    %251 = arith.addf %249, %250 : vector<8x128xf32>
    %cst_95 = arith.constant 5.000000e-01 : f32
    %252 = vector.broadcast %cst_95 : f32 to vector<8x128xf32>
    %253 = arith.mulf %252, %251 : vector<8x128xf32>
    %254 = vector.extract_strided_slice %245 {offsets = [0, 128], sizes = [8, 128], strides = [1, 1]} : vector<8x512xf32> to vector<8x128xf32>
    %cst_96 = arith.constant 5.000000e-01 : f32
    %255 = vector.broadcast %cst_96 : f32 to vector<8x128xf32>
    %256 = arith.mulf %255, %254 : vector<8x128xf32>
    %257 = math.tanh %256 : vector<8x128xf32>
    %cst_97 = arith.constant 1.000000e+00 : f32
    %258 = vector.broadcast %cst_97 : f32 to vector<8x128xf32>
    %259 = arith.addf %257, %258 : vector<8x128xf32>
    %cst_98 = arith.constant 5.000000e-01 : f32
    %260 = vector.broadcast %cst_98 : f32 to vector<8x128xf32>
    %261 = arith.mulf %260, %259 : vector<8x128xf32>
    %262 = vector.extract_strided_slice %245 {offsets = [0, 256], sizes = [8, 128], strides = [1, 1]} : vector<8x512xf32> to vector<8x128xf32>
    %263 = math.tanh %262 : vector<8x128xf32>
    %264 = vector.extract_strided_slice %245 {offsets = [0, 384], sizes = [8, 128], strides = [1, 1]} : vector<8x512xf32> to vector<8x128xf32>
    %cst_99 = arith.constant 5.000000e-01 : f32
    %265 = vector.broadcast %cst_99 : f32 to vector<8x128xf32>
    %266 = arith.mulf %265, %264 : vector<8x128xf32>
    %267 = math.tanh %266 : vector<8x128xf32>
    %cst_100 = arith.constant 1.000000e+00 : f32
    %268 = vector.broadcast %cst_100 : f32 to vector<8x128xf32>
    %269 = arith.addf %267, %268 : vector<8x128xf32>
    %cst_101 = arith.constant 5.000000e-01 : f32
    %270 = vector.broadcast %cst_101 : f32 to vector<8x128xf32>
    %271 = arith.mulf %270, %269 : vector<8x128xf32>
    %272 = arith.mulf %261, %235 : vector<8x128xf32>
    %273 = arith.mulf %253, %263 : vector<8x128xf32>
    %274 = arith.addf %272, %273 : vector<8x128xf32>
    %275 = math.tanh %274 : vector<8x128xf32>
    %276 = arith.mulf %271, %275 : vector<8x128xf32>
    %277 = arith.index_cast %c6_i32 : i32 to index
    %c0_102 = arith.constant 0 : index
    %c0_103 = arith.constant 0 : index
    %278 = vector.load %arg6[%277, %c0_102, %c0_103] : memref<8x8x128xf32, #tpu.memory_space<vmem>>, vector<1x8x128xf32>
    %279 = vector.shape_cast %278 : vector<1x8x128xf32> to vector<8x128xf32>
    %280 = vector.shape_cast %276 : vector<8x128xf32> to vector<1x8x128xf32>
    tpu.vector_store %arg6[%277, %c0_102, %c0_103], %280 {strides = array<i32>} : memref<8x8x128xf32, #tpu.memory_space<vmem>>, vector<1x8x128xf32>,
    %c7_i32 = arith.constant 7 : i32
    %281 = arith.truncf %276 : vector<8x128xf32> to vector<8x128xbf16>
    %c0_104 = arith.constant 0 : index
    %c0_105 = arith.constant 0 : index
    %282 = vector.load %arg2[%c0_104, %c0_105] : memref<128x512xbf16, #tpu.memory_space<vmem>>, vector<128x512xbf16>
    %cst_106 = arith.constant dense<0.000000e+00> : vector<8x512xf32>
    %283 = tpu.matmul %281, %282, %cst_106 {dimension_numbers = #tpu.dot_dimension_numbers<[1], [0], [0], [1], [0, 0, 1, 1], [], []>} : vector<8x128xbf16>, vector<128x512xbf16>, vector<8x512xf32> -> vector<8x512xf32>
    %284 = arith.addf %283, %5 : vector<8x512xf32>
    %285 = vector.extract_strided_slice %284 {offsets = [0, 0], sizes = [8, 128], strides = [1, 1]} : vector<8x512xf32> to vector<8x128xf32>
    %cst_107 = arith.constant 5.000000e-01 : f32
    %286 = vector.broadcast %cst_107 : f32 to vector<8x128xf32>
    %287 = arith.mulf %286, %285 : vector<8x128xf32>
    %288 = math.tanh %287 : vector<8x128xf32>
    %cst_108 = arith.constant 1.000000e+00 : f32
    %289 = vector.broadcast %cst_108 : f32 to vector<8x128xf32>
    %290 = arith.addf %288, %289 : vector<8x128xf32>
    %cst_109 = arith.constant 5.000000e-01 : f32
    %291 = vector.broadcast %cst_109 : f32 to vector<8x128xf32>
    %292 = arith.mulf %291, %290 : vector<8x128xf32>
    %293 = vector.extract_strided_slice %284 {offsets = [0, 128], sizes = [8, 128], strides = [1, 1]} : vector<8x512xf32> to vector<8x128xf32>
    %cst_110 = arith.constant 5.000000e-01 : f32
    %294 = vector.broadcast %cst_110 : f32 to vector<8x128xf32>
    %295 = arith.mulf %294, %293 : vector<8x128xf32>
    %296 = math.tanh %295 : vector<8x128xf32>
    %cst_111 = arith.constant 1.000000e+00 : f32
    %297 = vector.broadcast %cst_111 : f32 to vector<8x128xf32>
    %298 = arith.addf %296, %297 : vector<8x128xf32>
    %cst_112 = arith.constant 5.000000e-01 : f32
    %299 = vector.broadcast %cst_112 : f32 to vector<8x128xf32>
    %300 = arith.mulf %299, %298 : vector<8x128xf32>
    %301 = vector.extract_strided_slice %284 {offsets = [0, 256], sizes = [8, 128], strides = [1, 1]} : vector<8x512xf32> to vector<8x128xf32>
    %302 = math.tanh %301 : vector<8x128xf32>
    %303 = vector.extract_strided_slice %284 {offsets = [0, 384], sizes = [8, 128], strides = [1, 1]} : vector<8x512xf32> to vector<8x128xf32>
    %cst_113 = arith.constant 5.000000e-01 : f32
    %304 = vector.broadcast %cst_113 : f32 to vector<8x128xf32>
    %305 = arith.mulf %304, %303 : vector<8x128xf32>
    %306 = math.tanh %305 : vector<8x128xf32>
    %cst_114 = arith.constant 1.000000e+00 : f32
    %307 = vector.broadcast %cst_114 : f32 to vector<8x128xf32>
    %308 = arith.addf %306, %307 : vector<8x128xf32>
    %cst_115 = arith.constant 5.000000e-01 : f32
    %309 = vector.broadcast %cst_115 : f32 to vector<8x128xf32>
    %310 = arith.mulf %309, %308 : vector<8x128xf32>
    %311 = arith.mulf %300, %274 : vector<8x128xf32>
    %312 = arith.mulf %292, %302 : vector<8x128xf32>
    %313 = arith.addf %311, %312 : vector<8x128xf32>
    %314 = math.tanh %313 : vector<8x128xf32>
    %315 = arith.mulf %310, %314 : vector<8x128xf32>
    %316 = arith.index_cast %c7_i32 : i32 to index
    %c0_116 = arith.constant 0 : index
    %c0_117 = arith.constant 0 : index
    %317 = vector.load %arg6[%316, %c0_116, %c0_117] : memref<8x8x128xf32, #tpu.memory_space<vmem>>, vector<1x8x128xf32>
    %318 = vector.shape_cast %317 : vector<1x8x128xf32> to vector<8x128xf32>
    %319 = vector.shape_cast %315 : vector<8x128xf32> to vector<1x8x128xf32>
    tpu.vector_store %arg6[%316, %c0_116, %c0_117], %319 {strides = array<i32>} : memref<8x8x128xf32, #tpu.memory_space<vmem>>, vector<1x8x128xf32>,
    %c8_i32 = arith.constant 8 : i32
    %c0_118 = arith.constant 0 : index
    %c0_119 = arith.constant 0 : index
    %320 = vector.load %arg8[%c0_118, %c0_119] : memref<8x128xf32, #tpu.memory_space<vmem>>, vector<8x128xf32>
    tpu.vector_store %arg8[%c0_118, %c0_119], %315 {strides = array<i32>} : memref<8x128xf32, #tpu.memory_space<vmem>>, vector<8x128xf32>,
    %c0_120 = arith.constant 0 : index
    %c0_121 = arith.constant 0 : index
    %321 = vector.load %arg7[%c0_120, %c0_121] : memref<8x128xf32, #tpu.memory_space<vmem>>, vector<8x128xf32>
    tpu.vector_store %arg7[%c0_120, %c0_121], %313 {strides = array<i32>} : memref<8x128xf32, #tpu.memory_space<vmem>>, vector<8x128xf32>,
    return
  }
  func.func @transform_0(%arg0: i32, %arg1: i32) -> (i32, i32) {
    %c0_i32 = arith.constant 0 : i32
    %c0_i32_0 = arith.constant 0 : i32
    %c0_i32_1 = arith.constant 0 : i32
    return %c0_i32, %c0_i32_0 : i32, i32
  }
  func.func @transform_1(%arg0: i32, %arg1: i32) -> (i32, i32) {
    %c0_i32 = arith.constant 0 : i32
    %c0_i32_0 = arith.constant 0 : i32
    %c0_i32_1 = arith.constant 0 : i32
    return %c0_i32, %c0_i32_0 : i32, i32
  }
  func.func @transform_2(%arg0: i32, %arg1: i32) -> (i32, i32) {
    %c0_i32 = arith.constant 0 : i32
    %c0_i32_0 = arith.constant 0 : i32
    return %arg0, %c0_i32 : i32, i32
  }
  func.func @transform_3(%arg0: i32, %arg1: i32) -> (i32, i32) {
    %c0_i32 = arith.constant 0 : i32
    %c0_i32_0 = arith.constant 0 : i32
    return %arg0, %c0_i32 : i32, i32
  }
  func.func @transform_4(%arg0: i32, %arg1: i32) -> (i32, i32, i32) {
    %c0_i32 = arith.constant 0 : i32
    %c0_i32_0 = arith.constant 0 : i32
    return %arg1, %arg0, %c0_i32 : i32, i32, i32
  }
  func.func @transform_5(%arg0: i32, %arg1: i32) -> (i32, i32) {
    %c0_i32 = arith.constant 0 : i32
    %c0_i32_0 = arith.constant 0 : i32
    return %arg0, %c0_i32 : i32, i32
  }
}

</mosaic_0001>

<bundles_post_ra>
// kernel: tpu_custom_call.1
= control target key start
LH: loop header
LB: loop body
LE: loop exit
PB: predicated region body
PF: predicated region fallthrough
CT: control target
= control target key end

     0   :  { %11 = vsyncpa [#allocation4], 0  ;;  %s3593_s0 = inlined_call_operand.hbm [shape: bf16[128,512], index: 0, kind: input, shape index: {}]   ;;  %s3594_s1 = inlined_call_operand.hbm [shape: f32[1,512], index: 1, kind: input, shape index: {}]   ;;  %s3595_s2 = inlined_call_operand.hbm [shape: f32[8,128], index: 2, kind: input, shape index: {}]   ;;  %s3596_s3 = inlined_call_operand.hbm [shape: f32[8,128], index: 3, kind: input, shape index: {}]   ;;  %s3597_s4 = inlined_call_operand.hbm [shape: f32[8,8,128], index: 4, kind: output, shape index: {0}]   ;;  %s3598_s5 = inlined_call_operand.hbm [shape: f32[8,128], index: 5, kind: output, shape index: {1}]  }
   0x1   :  { %12 = vsyncpa [#allocation7], 0 }
   0x2   :  { %13 = vsyncpa [#allocation10], 0 }
   0x3   :  { %14 = vsyncpa [#allocation5], 0 }
   0x4   :  { %15 = vsyncpa [#allocation13], 0  ;;  %s3070_s18 = smov [#allocation6]   ;;  %s3071_s20 = smov [#allocation3]  }
   0x5   :  { %s34_s19 = sshll.u32 %s3070_s18, 4  ;;  %s21_s21 = sshll.u32 %s3071_s20, 4  ;;  %s35_s19 = int_to_ptr.vmem [resolvable:$true] %s34_s19  ;;  %s22_s21 = int_to_ptr.vmem [resolvable:$true] %s21_s21 }
   0x6   :  { %s2948_s22 = scalar_lea.vmem %s35_s19, 64  ;;  %p2953_p1 = scmp.lt.s32.totalorder %s35_s19, %s35_s19 }
   0x7   :  { %p2949_p0 = scmp.ne.s32.totalorder %s35_s19, %s2948_s22  ;;  %p2954_p2 = scmp.lt.s32.totalorder %s2948_s22, %s2948_s22 }
   0x9   :  { %p2955_p3 = por %p2954_p2, %p2953_p1 }
   0xb   :  { %p2956_p4 = pnand %p2955_p3, %p2949_p0 }
   0xd   :  { %2959 = shalt.err (!%p2956_p4)
}
   0xe   :  { %37 = dma.hbm_to_vmem [thread:$0]  %s3594_s1, 64, %s35_s19, [#allocation7]  }
   0xf   :  { %s2968_s25 = scalar_lea.vmem %s22_s21, 4096  ;;  %p2973_p6 = scmp.lt.s32.totalorder %s22_s21, %s22_s21 }
  0x10   :  { %p2969_p5 = scmp.ne.s32.totalorder %s22_s21, %s2968_s25  ;;  %p2974_p7 = scmp.lt.s32.totalorder %s2968_s25, %s2968_s25 }
  0x12   :  { %p2975_p8 = por %p2974_p7, %p2973_p6 }
  0x14   :  { %p2976_p9 = pnand %p2975_p8, %p2969_p5 }
  0x16   :  { %2979 = shalt.err (!%p2976_p9)
}
  0x17   :  { %s3072_s26 = smov 256   ;;  %s3073_s27 = smov 16  }
  0x18   :  { %27 = dma.hbm_to_vmem [thread:$0]  %s3593_s0, 4096, %s22_s21, [#allocation4], %s3072_s26, %s3072_s26, %s3073_s27  }
  0x19   :  { %s3074_s30 = smov [#allocation8]   ;;  %s3075_s7 = smov [#allocation9]  }
  0x1a   :  { %s44_s6 = sshll.u32 %s3074_s30, 4  ;;  %s54_s8 = sshll.u32 %s3075_s7, 4  ;;  %s45_s6 = int_to_ptr.vmem [resolvable:$true] %s44_s6  ;;  %s55_s8 = int_to_ptr.vmem [resolvable:$true] %s54_s8 }
  0x1b   :  { %s2988_s1 = scalar_lea.vmem %s45_s6, 128  ;;  %p2993_p11 = scmp.lt.s32.totalorder %s45_s6, %s45_s6 }
  0x1c   :  { %p2989_p10 = scmp.ne.s32.totalorder %s45_s6, %s2988_s1  ;;  %p2994_p12 = scmp.lt.s32.totalorder %s2988_s1, %s2988_s1 }
  0x1e   :  { %p2995_p13 = por %p2994_p12, %p2993_p11 }
  0x20   :  { %p2996_p0 = pnand %p2995_p13, %p2989_p10 }
  0x22   :  { %2999 = shalt.err (!%p2996_p0)
}
  0x23   :  { %47 = dma.hbm_to_vmem [thread:$0]  %s3595_s2, 128, %s45_s6, [#allocation7]  }
  0x24   :  { %s3008_s11 = scalar_lea.vmem %s55_s8, 128  ;;  %p3013_p2 = scmp.lt.s32.totalorder %s55_s8, %s55_s8 }
  0x25   :  { %p3009_p1 = scmp.ne.s32.totalorder %s55_s8, %s3008_s11  ;;  %p3014_p3 = scmp.lt.s32.totalorder %s3008_s11, %s3008_s11 }
  0x27   :  { %p3015_p4 = por %p3014_p3, %p3013_p2 }
  0x29   :  { %p3016_p5 = pnand %p3015_p4, %p3009_p1 }
  0x2b   :  { %3019 = shalt.err (!%p3016_p5)
}
  0x2c   :  { %57 = dma.hbm_to_vmem [thread:$0]  %s3596_s3, 128, %s55_s8, [#allocation10]  }
  0x2d   :  { %3060 = dma.done.wait [#allocation4], 4096  }
  0x2e   :  { %3061 = vsyncadd [#allocation4], 4294963200 }
  0x2f   :  { %3062 = dma.done.wait [#allocation7], 192  }
  0x30   :  { %3063 = vsyncadd [#allocation7], 4294967104 }
  0x31   :  { %3064 = dma.done.wait [#allocation10], 128  }
  0x32   :  { %3065 = vsyncadd [#allocation10], 4294967168  ;;  %v3076_v0 = vmov 0   ;;  %v3125_v1 = vld [vmem:[#allocation3 + $0xe4] ss:$16 sps:$4 sm:$0xff]   ;;  %v81_v35 = vlaneseq  ;;  %s3077_s2 = smov [#allocation12]  }
  0x33   :  { %328 = vmatprep.mubr.bf16.mxu0 %v3076_v0  ;;  %369 = vmatprep.mubr.bf16.mxu1 %v3076_v0  ;;  %v3127_v2 = vld [vmem:[#allocation3 + $0xe0] ss:$16 sps:$4 sm:$0xff]   ;;  %v3130_v3 = vld [vmem:[#allocation3 + $0xec] ss:$16 sps:$4 sm:$0xff]   ;;  %v3132_v4 = vld [vmem:[#allocation3 + $0xe8] ss:$16 sps:$4 sm:$0xff]  }
  0x34   :  { %296 = vmatprep.subr.bf16.mxu0 %v3125_v1  ;;  %v3135_v5 = vld [vmem:[#allocation3 + $0xc4] ss:$16 sps:$4 sm:$0xff]   ;;  %v3137_v6 = vld [vmem:[#allocation3 + $0xc0] ss:$16 sps:$4 sm:$0xff]   ;;  %337 = vmatprep.subr.bf16.mxu1 %v3130_v3  ;;  %v3140_v7 = vld [vmem:[#allocation3 + $0xcc] ss:$16 sps:$4 sm:$0xff]  }
  0x35   :  { %297 = vmatpush1.bf16.msra.mxu0 %v3127_v2  ;;  %338 = vmatpush1.bf16.msra.mxu1 %v3132_v4  ;;  %v3144_v8 = vld [vmem:[#allocation3 + $0xc8] ss:$16 sps:$4 sm:$0xff]   ;;  %v3147_v9 = vld [vmem:[#allocation3 + $0xa4] ss:$16 sps:$4 sm:$0xff]   ;;  %v3150_v10 = vld [vmem:[#allocation3 + $0xa0] ss:$16 sps:$4 sm:$0xff]  }
  0x36   :  { %298 = vmatprep.subr.bf16.mxu0 %v3135_v5  ;;  %339 = vmatprep.subr.bf16.mxu1 %v3140_v7  ;;  %v3152_v11 = vld [vmem:[#allocation3 + $0xac] ss:$16 sps:$4 sm:$0xff]   ;;  %v3155_v12 = vld [vmem:[#allocation3 + $0x84] ss:$16 sps:$4 sm:$0xff]   ;;  %v3158_v13 = vld [vmem:[#allocation3 + $0xa8] ss:$16 sps:$4 sm:$0xff]  }
  0x37   :  { %v3161_v14 = vld [vmem:[#allocation3 + $0x8c] ss:$16 sps:$4 sm:$0xff]   ;;  %v3164_v15 = vld [vmem:[#allocation3 + $0x80] ss:$16 sps:$4 sm:$0xff]   ;;  %v3167_v16 = vld [vmem:[#allocation3 + $0x64] ss:$16 sps:$4 sm:$0xff]  }
  0x38   :  { %v3170_v17 = vld [vmem:[#allocation3 + $0x88] ss:$16 sps:$4 sm:$0xff]   ;;  %v3173_v18 = vld [vmem:[#allocation3 + $0x6c] ss:$16 sps:$4 sm:$0xff]   ;;  %v3176_v19 = vld [vmem:[#allocation3 + $0x60] ss:$16 sps:$4 sm:$0xff]  }
  0x39   :  { %299 = vmatpush1.bf16.msra.mxu0 %v3137_v6  ;;  %340 = vmatpush1.bf16.msra.mxu1 %v3144_v8  ;;  %v3179_v20 = vld [vmem:[#allocation3 + $0x44] ss:$16 sps:$4 sm:$0xff]   ;;  %v3182_v21 = vld [vmem:[#allocation3 + $0x68] ss:$16 sps:$4 sm:$0xff]   ;;  %v3185_v22 = vld [vmem:[#allocation3 + $0x4c] ss:$16 sps:$4 sm:$0xff]  }
  0x3a   :  { %300 = vmatprep.subr.bf16.mxu0 %v3147_v9  ;;  %341 = vmatprep.subr.bf16.mxu1 %v3152_v11  ;;  %v3188_v23 = vld [vmem:[#allocation3 + $0x40] ss:$16 sps:$4 sm:$0xff]   ;;  %v3191_v24 = vld [vmem:[#allocation3 + $0x24] ss:$16 sps:$4 sm:$0xff]   ;;  %v3194_v25 = vld [vmem:[#allocation3 + $0x48] ss:$16 sps:$4 sm:$0xff]  }
  0x3b   :  { %v3196_v26 = vld [vmem:[#allocation3 + $0x20] ss:$16 sps:$4 sm:$0xff]   ;;  %v3198_v27 = vld [vmem:[#allocation3 + $0x2c] ss:$16 sps:$4 sm:$0xff]   ;;  %v3201_v28 = vld [vmem:[#allocation3 + $0x4] ss:$16 sps:$4 sm:$0xff]  }
  0x3c   :  { %v3204_v29 = vld [vmem:[#allocation3 + $0x28] ss:$16 sps:$4 sm:$0xff]   ;;  %v3207_v30 = vld [vmem:[#allocation3 + $0xc] ss:$16 sps:$4 sm:$0xff]   ;;  %v3210_v31 = vld [vmem:[#allocation3] ss:$16 sps:$4 sm:$0xff]  }
  0x3d   :  { %301 = vmatpush1.bf16.msra.mxu0 %v3150_v10  ;;  %342 = vmatpush1.bf16.msra.mxu1 %v3158_v13  ;;  %v75_v32 = vld [vmem:[#allocation8] sm:$0xff]  ;;  %v82_v36 = vshrl.u32 %v81_v35, 7  ;;  %v79_v38 = vld [vmem:[#allocation6] sm:$0xf]  ;;  %s2482_s3 = sshll.u32 %s3077_s2, 4  ;;  %s2483_s3 = int_to_ptr.vmem [resolvable:$true] %s2482_s3 }
  0x3e   :  { %302 = vmatprep.subr.bf16.mxu0 %v3155_v12  ;;  %343 = vmatprep.subr.bf16.mxu1 %v3161_v14  ;;  %v3214_v33 = vld [vmem:[#allocation3 + $0x8] ss:$16 sps:$4 sm:$0xff]   ;;  %v103_v34 = vpack.c.bf16 %v75_v32, %v75_v32  ;;  %s3020_s13 = scalar_lea.vmem %s2483_s3, 128  ;;  %p3025_p7 = scmp.lt.s32.totalorder %s2483_s3, %s2483_s3 }
  0x3f   :  { %v83_v37 = vsub.s32 0, %v82_v36  ;;  %v87_v39 = vsub.s32 1, %v82_v36  ;;  %v91_v41 = vsub.s32 2, %v82_v36  ;;  %v95_v54 = vsub.s32 3, %v82_v36  ;;  %p3021_p6 = scmp.ne.s32.totalorder %s2483_s3, %s3020_s13  ;;  %p3026_p8 = scmp.lt.s32.totalorder %s3020_s13, %s3020_s13 }
  0x41   :  { %303 = vmatpush1.bf16.msra.mxu0 %v3164_v15  ;;  %344 = vmatpush1.bf16.msra.mxu1 %v3170_v17  ;;  %v3257_v40 = vrot.slane %v79_v38, %v83_v37  ;;  %v3259_v42 = vrot.slane %v79_v38, %v87_v39  ;;  %v3262_v45 = vrot.slane %v79_v38, %v91_v41  ;;  %v77_v37 = vld [vmem:[#allocation9] sm:$0xff]  ;;  %p3027_p9 = por %p3026_p8, %p3025_p7 }
  0x42   :  { %304 = vmatprep.subr.bf16.mxu0 %v3167_v16  ;;  %345 = vmatprep.subr.bf16.mxu1 %v3173_v18  ;;  %v3266_v58 = vrot.slane %v79_v38, %v95_v54 }
  0x43   :  { %p3028_p10 = pnand %p3027_p9, %p3021_p6 }
  0x45   :  { %305 = vmatpush1.bf16.msra.mxu0 %v3176_v19  ;;  %346 = vmatpush1.bf16.msra.mxu1 %v3182_v21 }
  0x46   :  { %306 = vmatprep.subr.bf16.mxu0 %v3179_v20  ;;  %347 = vmatprep.subr.bf16.mxu1 %v3185_v22 }
  0x49   :  { %307 = vmatpush1.bf16.msra.mxu0 %v3188_v23  ;;  %348 = vmatpush1.bf16.msra.mxu1 %v3194_v25 }
  0x4a   :  { %308 = vmatprep.subr.bf16.mxu0 %v3191_v24  ;;  %349 = vmatprep.subr.bf16.mxu1 %v3198_v27 }
  0x4d   :  { %309 = vmatpush1.bf16.msra.mxu0 %v3196_v26  ;;  %350 = vmatpush1.bf16.msra.mxu1 %v3204_v29 }
  0x4e   :  { %310 = vmatprep.subr.bf16.mxu0 %v3201_v28  ;;  %351 = vmatprep.subr.bf16.mxu1 %v3207_v30 }
  0x51   :  { %311 = vmatpush1.bf16.msra.mxu0 %v3210_v31  ;;  %352 = vmatpush1.bf16.msra.mxu1 %v3214_v33 }
  0x52   :  { %590 = vmatprep.subr.bf16.mxu0 %v3125_v1  ;;  %631 = vmatprep.subr.bf16.mxu1 %v3130_v3 }
  0x54   :  { %329 = vmatmul.mubr.bf16.vlgmr.msra.gmra.mxu0 %v103_v34  ;;  %370 = vmatmul.mubr.bf16.vlgmr.msra.gmra.mxu1 %v103_v34 }
  0x55   :  { %591 = vmatpush1.bf16.msra.mxu0 %v3127_v2  ;;  %622 = vmatprep.mubr.bf16.mxu0 %v3076_v0 }
  0x56   :  { %592 = vmatprep.subr.bf16.mxu0 %v3135_v5  ;;  %632 = vmatpush1.bf16.msra.mxu1 %v3132_v4 }
  0x57   :  { %663 = vmatprep.mubr.bf16.mxu1 %v3076_v0  ;;  %633 = vmatprep.subr.bf16.mxu1 %v3140_v7 }
  0x59   :  { %593 = vmatpush1.bf16.msra.mxu0 %v3137_v6 }
  0x5a   :  { %594 = vmatprep.subr.bf16.mxu0 %v3147_v9  ;;  %634 = vmatpush1.bf16.msra.mxu1 %v3144_v8 }
  0x5b   :  { %635 = vmatprep.subr.bf16.mxu1 %v3152_v11 }
  0x5d   :  { %595 = vmatpush1.bf16.msra.mxu0 %v3150_v10 }
  0x5e   :  { %596 = vmatprep.subr.bf16.mxu0 %v3155_v12  ;;  %636 = vmatpush1.bf16.msra.mxu1 %v3158_v13 }
  0x5f   :  { %637 = vmatprep.subr.bf16.mxu1 %v3161_v14 }
  0x61   :  { %597 = vmatpush1.bf16.msra.mxu0 %v3164_v15 }
  0x62   :  { %598 = vmatprep.subr.bf16.mxu0 %v3167_v16  ;;  %638 = vmatpush1.bf16.msra.mxu1 %v3170_v17 }
  0x63   :  { %639 = vmatprep.subr.bf16.mxu1 %v3173_v18 }
  0x65   :  { %599 = vmatpush1.bf16.msra.mxu0 %v3176_v19 }
  0x66   :  { %600 = vmatprep.subr.bf16.mxu0 %v3179_v20  ;;  %640 = vmatpush1.bf16.msra.mxu1 %v3182_v21 }
  0x67   :  { %641 = vmatprep.subr.bf16.mxu1 %v3185_v22 }
  0x69   :  { %601 = vmatpush1.bf16.msra.mxu0 %v3188_v23 }
  0x6a   :  { %602 = vmatprep.subr.bf16.mxu0 %v3191_v24  ;;  %642 = vmatpush1.bf16.msra.mxu1 %v3194_v25 }
  0x6b   :  { %643 = vmatprep.subr.bf16.mxu1 %v3198_v27 }
  0x6d   :  { %603 = vmatpush1.bf16.msra.mxu0 %v3196_v26 }
  0x6e   :  { %604 = vmatprep.subr.bf16.mxu0 %v3201_v28  ;;  %644 = vmatpush1.bf16.msra.mxu1 %v3204_v29 }
  0x6f   :  { %645 = vmatprep.subr.bf16.mxu1 %v3207_v30 }
  0x71   :  { %605 = vmatpush1.bf16.msra.mxu0 %v3210_v31 }
  0x72   :  { %885 = vmatprep.subr.bf16.mxu0 %v3125_v1  ;;  %646 = vmatpush1.bf16.msra.mxu1 %v3214_v33 }
  0x73   :  { %926 = vmatprep.subr.bf16.mxu1 %v3130_v3 }
 0x114   :  { %v330_v43 = vpop.f32.mrf.mxu0  ;;  %v371_v47 = vpop.f32.mrf.mxu1 }
 0x115   :  { %v331_v44 = vadd.f32 %v330_v43, %v3257_v40  ;;  %v372_v53 = vadd.f32 %v371_v47, %v3262_v45 }
 0x116   :  { %v332_v46 = vpop.f32.mrf.mxu0  ;;  %v373_v51 = vpop.f32.mrf.mxu1 }
 0x117   :  { %v378_v48 = vmul.f32 0.5, %v331_v44  ;;  %v333_v49 = vadd.f32 %v332_v46, %v3259_v42  ;;  %v374_v59 = vadd.f32 %v373_v51, %v3266_v58 }
 0x118   :  { %v334_v50 = vpop.f32.mrf.mxu0  ;;  %v375_v56 = vpop.f32.mrf.mxu1 }
 0x119   :  { %2860 = vtanh.f32 %v378_v48  ;;  %v382_v52 = vmul.f32 0.5, %v333_v49  ;;  %v387_v60 = vmul.f32 0.5, %v374_v59 }
 0x11a   :  { %v335_v55 = vpop.f32.mrf.mxu0  ;;  %v376_v57 = vpop.f32.mrf.mxu1 }
 0x11b   :  { %2862 = vtanh.f32 %v382_v52 }
 0x11c   :  { %2864 = vtanh.f32 %v372_v53 }
 0x11d   :  { %2866 = vtanh.f32 %v387_v60 }
 0x126   :  { %v2861_v61 = vpop.eup %2860 }
 0x127   :  { %v380_v62 = vadd.f32 1.0, %v2861_v61 }
 0x128   :  { %v2863_v63 = vpop.eup %2862 }
 0x129   :  { %v381_v32 = vmul.f32 0.5, %v380_v62  ;;  %v384_v34 = vadd.f32 1.0, %v2863_v63  ;;  %v2865_v35 = vpop.eup %2864 }
 0x12a   :  { %v2867_v38 = vpop.eup %2866 }
 0x12b   :  { %v385_v39 = vmul.f32 0.5, %v384_v34  ;;  %v392_v41 = vmul.f32 %v2865_v35, %v381_v32  ;;  %v389_v44 = vadd.f32 1.0, %v2867_v38 }
 0x12d   :  { %v391_v36 = vmul.f32 %v385_v39, %v77_v37  ;;  %v390_v46 = vmul.f32 0.5, %v389_v44 }
 0x12f   :  { %v3269_v43 = vadd.f32 %v392_v41, %v391_v36 }
 0x131   :  { %2868 = vtanh.f32 %v3269_v43 }
 0x13e   :  { %v2869_v47 = vpop.eup %2868 }
 0x13f   :  { %v395_v48 = vmul.f32 %v2869_v47, %v390_v46 }
 0x141   :  { %396 = vst [vmem:[#allocation11] sm:$0xff] %v395_v48  ;;  %v397_v49 = vpack.c.bf16 %v395_v48, %v395_v48 }
 0x143   :  { %623 = vmatmul.mubr.bf16.vlgmr.msra.gmra.mxu0 %v397_v49  ;;  %664 = vmatmul.mubr.bf16.vlgmr.msra.gmra.mxu1 %v397_v49 }
 0x144   :  { %886 = vmatpush1.bf16.msra.mxu0 %v3127_v2  ;;  %927 = vmatpush1.bf16.msra.mxu1 %v3132_v4 }
 0x145   :  { %887 = vmatprep.subr.bf16.mxu0 %v3135_v5  ;;  %928 = vmatprep.subr.bf16.mxu1 %v3140_v7 }
 0x146   :  { %917 = vmatprep.mubr.bf16.mxu0 %v3076_v0  ;;  %958 = vmatprep.mubr.bf16.mxu1 %v3076_v0 }
 0x148   :  { %888 = vmatpush1.bf16.msra.mxu0 %v3137_v6  ;;  %929 = vmatpush1.bf16.msra.mxu1 %v3144_v8 }
 0x149   :  { %889 = vmatprep.subr.bf16.mxu0 %v3147_v9  ;;  %930 = vmatprep.subr.bf16.mxu1 %v3152_v11 }
 0x14c   :  { %890 = vmatpush1.bf16.msra.mxu0 %v3150_v10  ;;  %931 = vmatpush1.bf16.msra.mxu1 %v3158_v13 }
 0x14d   :  { %891 = vmatprep.subr.bf16.mxu0 %v3155_v12  ;;  %932 = vmatprep.subr.bf16.mxu1 %v3161_v14 }
 0x150   :  { %892 = vmatpush1.bf16.msra.mxu0 %v3164_v15  ;;  %933 = vmatpush1.bf16.msra.mxu1 %v3170_v17 }
 0x151   :  { %893 = vmatprep.subr.bf16.mxu0 %v3167_v16  ;;  %934 = vmatprep.subr.bf16.mxu1 %v3173_v18 }
 0x154   :  { %894 = vmatpush1.bf16.msra.mxu0 %v3176_v19  ;;  %935 = vmatpush1.bf16.msra.mxu1 %v3182_v21 }
 0x155   :  { %895 = vmatprep.subr.bf16.mxu0 %v3179_v20  ;;  %936 = vmatprep.subr.bf16.mxu1 %v3185_v22 }
 0x158   :  { %896 = vmatpush1.bf16.msra.mxu0 %v3188_v23  ;;  %937 = vmatpush1.bf16.msra.mxu1 %v3194_v25 }
 0x159   :  { %897 = vmatprep.subr.bf16.mxu0 %v3191_v24  ;;  %938 = vmatprep.subr.bf16.mxu1 %v3198_v27 }
 0x15c   :  { %898 = vmatpush1.bf16.msra.mxu0 %v3196_v26  ;;  %939 = vmatpush1.bf16.msra.mxu1 %v3204_v29 }
 0x15d   :  { %899 = vmatprep.subr.bf16.mxu0 %v3201_v28  ;;  %940 = vmatprep.subr.bf16.mxu1 %v3207_v30 }
 0x160   :  { %900 = vmatpush1.bf16.msra.mxu0 %v3210_v31  ;;  %941 = vmatpush1.bf16.msra.mxu1 %v3214_v33 }
 0x161   :  { %1180 = vmatprep.subr.bf16.mxu0 %v3125_v1  ;;  %1221 = vmatprep.subr.bf16.mxu1 %v3130_v3 }
 0x203   :  { %v624_v50 = vpop.f32.mrf.mxu0  ;;  %v665_v51 = vpop.f32.mrf.mxu1 }
 0x204   :  { %v625_v52 = vadd.f32 %v624_v50, %v3257_v40  ;;  %v666_v63 = vadd.f32 %v665_v51, %v3262_v45 }
 0x205   :  { %v626_v53 = vpop.f32.mrf.mxu0  ;;  %v667_v54 = vpop.f32.mrf.mxu1 }
 0x206   :  { %v672_v55 = vmul.f32 0.5, %v625_v52  ;;  %v627_v56 = vadd.f32 %v626_v53, %v3259_v42  ;;  %v668_v1 = vadd.f32 %v667_v54, %v3266_v58  ;;  %v3356_v53 = vld [vmem:[#allocation3 + $0xe4] ss:$16 sps:$4 sm:$0xff]   ;;  %v3358_v54 = vld [vmem:[#allocation3 + $0xec] ss:$16 sps:$4 sm:$0xff]  }
 0x207   :  { %v628_v57 = vpop.f32.mrf.mxu0  ;;  %v669_v59 = vpop.f32.mrf.mxu1 }
 0x208   :  { %2870 = vtanh.f32 %v672_v55  ;;  %v676_v60 = vmul.f32 0.5, %v627_v56  ;;  %v681_v3 = vmul.f32 0.5, %v668_v1  ;;  %v3360_v55 = vld [vmem:[#allocation3 + $0xe0] ss:$16 sps:$4 sm:$0xff]   ;;  %v3362_v56 = vld [vmem:[#allocation3 + $0xe8] ss:$16 sps:$4 sm:$0xff]  }
 0x209   :  { %v629_v61 = vpop.f32.mrf.mxu0  ;;  %v670_v62 = vpop.f32.mrf.mxu1  ;;  %v3368_v57 = vld [vmem:[#allocation3 + $0xc4] ss:$16 sps:$4 sm:$0xff]   ;;  %v3370_v59 = vld [vmem:[#allocation3 + $0xcc] ss:$16 sps:$4 sm:$0xff]   ;;  %v3384_v1 = vld [vmem:[#allocation3 + $0xa0] ss:$16 sps:$4 sm:$0xff]  }
 0x20a   :  { %2872 = vtanh.f32 %v676_v60  ;;  %v3372_v60 = vld [vmem:[#allocation3 + $0xc0] ss:$16 sps:$4 sm:$0xff]   ;;  %v3374_v61 = vld [vmem:[#allocation3 + $0xc8] ss:$16 sps:$4 sm:$0xff]   ;;  %v3380_v62 = vld [vmem:[#allocation3 + $0xa4] ss:$16 sps:$4 sm:$0xff]  }
 0x20b   :  { %2874 = vtanh.f32 %v666_v63  ;;  %v3382_v63 = vld [vmem:[#allocation3 + $0xac] ss:$16 sps:$4 sm:$0xff]  }
 0x20c   :  { %2876 = vtanh.f32 %v681_v3  ;;  %v3386_v3 = vld [vmem:[#allocation3 + $0xa8] ss:$16 sps:$4 sm:$0xff]  }
 0x215   :  { %v2871_v32 = vpop.eup %2870 }
 0x216   :  { %v674_v34 = vadd.f32 1.0, %v2871_v32  ;;  %v3392_v32 = vld [vmem:[#allocation3 + $0x84] ss:$16 sps:$4 sm:$0xff]  }
 0x217   :  { %v2873_v35 = vpop.eup %2872 }
 0x218   :  { %v675_v37 = vmul.f32 0.5, %v674_v34  ;;  %v678_v39 = vadd.f32 1.0, %v2873_v35  ;;  %v2875_v41 = vpop.eup %2874  ;;  %v3394_v34 = vld [vmem:[#allocation3 + $0x8c] ss:$16 sps:$4 sm:$0xff]   ;;  %v3396_v35 = vld [vmem:[#allocation3 + $0x80] ss:$16 sps:$4 sm:$0xff]  }
 0x219   :  { %v2877_v47 = vpop.eup %2876 }
 0x21a   :  { %v679_v36 = vmul.f32 0.5, %v678_v39  ;;  %v686_v44 = vmul.f32 %v2875_v41, %v675_v37  ;;  %v683_v48 = vadd.f32 1.0, %v2877_v47  ;;  %v3398_v37 = vld [vmem:[#allocation3 + $0x88] ss:$16 sps:$4 sm:$0xff]   ;;  %v3404_v39 = vld [vmem:[#allocation3 + $0x64] ss:$16 sps:$4 sm:$0xff]  }
 0x21b   :  { %v3408_v41 = vld [vmem:[#allocation3 + $0x60] ss:$16 sps:$4 sm:$0xff]  }
 0x21c   :  { %v685_v38 = vmul.f32 %v679_v36, %v3269_v43  ;;  %v684_v49 = vmul.f32 0.5, %v683_v48  ;;  %v3406_v36 = vld [vmem:[#allocation3 + $0x6c] ss:$16 sps:$4 sm:$0xff]   ;;  %v3420_v47 = vld [vmem:[#allocation3 + $0x40] ss:$16 sps:$4 sm:$0xff]  }
 0x21d   :  { %v3422_v48 = vld [vmem:[#allocation3 + $0x48] ss:$16 sps:$4 sm:$0xff]  }
 0x21e   :  { %v3311_v46 = vadd.f32 %v686_v44, %v685_v38  ;;  %v3410_v38 = vld [vmem:[#allocation3 + $0x68] ss:$16 sps:$4 sm:$0xff]   ;;  %v3416_v44 = vld [vmem:[#allocation3 + $0x44] ss:$16 sps:$4 sm:$0xff]  }
 0x220   :  { %2878 = vtanh.f32 %v3311_v46 }
 0x22d   :  { %v2879_v50 = vpop.eup %2878 }
 0x22e   :  { %v689_v51 = vmul.f32 %v2879_v50, %v684_v49  ;;  %v3428_v49 = vld [vmem:[#allocation3 + $0x24] ss:$16 sps:$4 sm:$0xff]   ;;  %v3430_v50 = vld [vmem:[#allocation3 + $0x2c] ss:$16 sps:$4 sm:$0xff]  }
 0x230   :  { %691 = vst [vmem:[#allocation11 + $0x8] sm:$0xff] %v689_v51  ;;  %v692_v52 = vpack.c.bf16 %v689_v51, %v689_v51  ;;  %v3432_v51 = vld [vmem:[#allocation3 + $0x20] ss:$16 sps:$4 sm:$0xff]  }
 0x232   :  { %918 = vmatmul.mubr.bf16.vlgmr.msra.gmra.mxu0 %v692_v52  ;;  %959 = vmatmul.mubr.bf16.vlgmr.msra.gmra.mxu1 %v692_v52  ;;  %v3434_v52 = vld [vmem:[#allocation3 + $0x28] ss:$16 sps:$4 sm:$0xff]  }
 0x233   :  { %1181 = vmatpush1.bf16.msra.mxu0 %v3127_v2  ;;  %1222 = vmatpush1.bf16.msra.mxu1 %v3132_v4 }
 0x234   :  { %1182 = vmatprep.subr.bf16.mxu0 %v3135_v5  ;;  %1223 = vmatprep.subr.bf16.mxu1 %v3140_v7 }
 0x235   :  { %1212 = vmatprep.mubr.bf16.mxu0 %v3076_v0  ;;  %1253 = vmatprep.mubr.bf16.mxu1 %v3076_v0 }
 0x237   :  { %1183 = vmatpush1.bf16.msra.mxu0 %v3137_v6  ;;  %1224 = vmatpush1.bf16.msra.mxu1 %v3144_v8 }
 0x238   :  { %1184 = vmatprep.subr.bf16.mxu0 %v3147_v9  ;;  %1225 = vmatprep.subr.bf16.mxu1 %v3152_v11 }
 0x23b   :  { %1185 = vmatpush1.bf16.msra.mxu0 %v3150_v10  ;;  %1226 = vmatpush1.bf16.msra.mxu1 %v3158_v13 }
 0x23c   :  { %1186 = vmatprep.subr.bf16.mxu0 %v3155_v12  ;;  %1227 = vmatprep.subr.bf16.mxu1 %v3161_v14 }
 0x23f   :  { %1187 = vmatpush1.bf16.msra.mxu0 %v3164_v15  ;;  %1228 = vmatpush1.bf16.msra.mxu1 %v3170_v17 }
 0x240   :  { %1188 = vmatprep.subr.bf16.mxu0 %v3167_v16  ;;  %1229 = vmatprep.subr.bf16.mxu1 %v3173_v18 }
 0x243   :  { %1189 = vmatpush1.bf16.msra.mxu0 %v3176_v19  ;;  %1230 = vmatpush1.bf16.msra.mxu1 %v3182_v21 }
 0x244   :  { %1190 = vmatprep.subr.bf16.mxu0 %v3179_v20  ;;  %1231 = vmatprep.subr.bf16.mxu1 %v3185_v22 }
 0x247   :  { %1191 = vmatpush1.bf16.msra.mxu0 %v3188_v23  ;;  %1232 = vmatpush1.bf16.msra.mxu1 %v3194_v25 }
 0x248   :  { %1192 = vmatprep.subr.bf16.mxu0 %v3191_v24  ;;  %1233 = vmatprep.subr.bf16.mxu1 %v3198_v27 }
 0x24b   :  { %1193 = vmatpush1.bf16.msra.mxu0 %v3196_v26  ;;  %1234 = vmatpush1.bf16.msra.mxu1 %v3204_v29 }
 0x24c   :  { %1194 = vmatprep.subr.bf16.mxu0 %v3201_v28  ;;  %1235 = vmatprep.subr.bf16.mxu1 %v3207_v30 }
 0x24f   :  { %1195 = vmatpush1.bf16.msra.mxu0 %v3210_v31  ;;  %1236 = vmatpush1.bf16.msra.mxu1 %v3214_v33 }
 0x250   :  { %1475 = vmatprep.subr.bf16.mxu0 %v3356_v53  ;;  %1516 = vmatprep.subr.bf16.mxu1 %v3358_v54 }
 0x2f2   :  { %v919_v2 = vpop.f32.mrf.mxu0  ;;  %v960_v4 = vpop.f32.mrf.mxu1 }
 0x2f3   :  { %v920_v5 = vadd.f32 %v919_v2, %v3257_v40  ;;  %v961_v15 = vadd.f32 %v960_v4, %v3262_v45  ;;  %v3440_v2 = vld [vmem:[#allocation3 + $0x4] ss:$16 sps:$4 sm:$0xff]   ;;  %v3442_v4 = vld [vmem:[#allocation3 + $0xc] ss:$16 sps:$4 sm:$0xff]  }
 0x2f4   :  { %v921_v6 = vpop.f32.mrf.mxu0  ;;  %v962_v7 = vpop.f32.mrf.mxu1 }
 0x2f5   :  { %v967_v8 = vmul.f32 0.5, %v920_v5  ;;  %v922_v9 = vadd.f32 %v921_v6, %v3259_v42  ;;  %v963_v16 = vadd.f32 %v962_v7, %v3266_v58  ;;  %v3444_v5 = vld [vmem:[#allocation3] ss:$16 sps:$4 sm:$0xff]   ;;  %v3446_v6 = vld [vmem:[#allocation3 + $0x8] ss:$16 sps:$4 sm:$0xff]  }
 0x2f6   :  { %v923_v10 = vpop.f32.mrf.mxu0  ;;  %v964_v11 = vpop.f32.mrf.mxu1 }
 0x2f7   :  { %2880 = vtanh.f32 %v967_v8  ;;  %v971_v12 = vmul.f32 0.5, %v922_v9  ;;  %v976_v17 = vmul.f32 0.5, %v963_v16 }
 0x2f8   :  { %v924_v13 = vpop.f32.mrf.mxu0  ;;  %v965_v14 = vpop.f32.mrf.mxu1 }
 0x2f9   :  { %2882 = vtanh.f32 %v971_v12 }
 0x2fa   :  { %2884 = vtanh.f32 %v961_v15 }
 0x2fb   :  { %2886 = vtanh.f32 %v976_v17 }
 0x304   :  { %v2881_v18 = vpop.eup %2880 }
 0x305   :  { %v969_v19 = vadd.f32 1.0, %v2881_v18 }
 0x306   :  { %v2883_v20 = vpop.eup %2882 }
 0x307   :  { %v970_v21 = vmul.f32 0.5, %v969_v19  ;;  %v973_v22 = vadd.f32 1.0, %v2883_v20  ;;  %v2885_v24 = vpop.eup %2884 }
 0x308   :  { %v2887_v28 = vpop.eup %2886 }
 0x309   :  { %v974_v23 = vmul.f32 0.5, %v973_v22  ;;  %v981_v26 = vmul.f32 %v2885_v24, %v970_v21  ;;  %v978_v29 = vadd.f32 1.0, %v2887_v28 }
 0x30b   :  { %v980_v25 = vmul.f32 %v974_v23, %v3311_v46  ;;  %v979_v30 = vmul.f32 0.5, %v978_v29  ;;  %v3418_v46 = vld [vmem:[#allocation3 + $0x4c] ss:$16 sps:$4 sm:$0xff]  }
 0x30d   :  { %v3351_v27 = vadd.f32 %v981_v26, %v980_v25 }
 0x30f   :  { %2888 = vtanh.f32 %v3351_v27 }
 0x31c   :  { %v2889_v31 = vpop.eup %2888 }
 0x31d   :  { %v984_v33 = vmul.f32 %v2889_v31, %v979_v30 }
 0x31f   :  { %986 = vst [vmem:[#allocation11 + $0x10] sm:$0xff] %v984_v33  ;;  %v987_v43 = vpack.c.bf16 %v984_v33, %v984_v33 }
 0x321   :  { %1213 = vmatmul.mubr.bf16.vlgmr.msra.gmra.mxu0 %v987_v43  ;;  %1254 = vmatmul.mubr.bf16.vlgmr.msra.gmra.mxu1 %v987_v43 }
 0x322   :  { %1507 = vmatprep.mubr.bf16.mxu0 %v3076_v0  ;;  %1548 = vmatprep.mubr.bf16.mxu1 %v3076_v0 }
 0x323   :  { %1476 = vmatpush1.bf16.msra.mxu0 %v3360_v55  ;;  %1517 = vmatpush1.bf16.msra.mxu1 %v3362_v56 }
 0x324   :  { %1477 = vmatprep.subr.bf16.mxu0 %v3368_v57  ;;  %1518 = vmatprep.subr.bf16.mxu1 %v3370_v59 }
 0x327   :  { %1478 = vmatpush1.bf16.msra.mxu0 %v3372_v60  ;;  %1519 = vmatpush1.bf16.msra.mxu1 %v3374_v61 }
 0x328   :  { %1479 = vmatprep.subr.bf16.mxu0 %v3380_v62  ;;  %1520 = vmatprep.subr.bf16.mxu1 %v3382_v63 }
 0x32b   :  { %1480 = vmatpush1.bf16.msra.mxu0 %v3384_v1  ;;  %1521 = vmatpush1.bf16.msra.mxu1 %v3386_v3 }
 0x32c   :  { %1481 = vmatprep.subr.bf16.mxu0 %v3392_v32  ;;  %1522 = vmatprep.subr.bf16.mxu1 %v3394_v34 }
 0x32f   :  { %1482 = vmatpush1.bf16.msra.mxu0 %v3396_v35  ;;  %1523 = vmatpush1.bf16.msra.mxu1 %v3398_v37 }
 0x330   :  { %1483 = vmatprep.subr.bf16.mxu0 %v3404_v39  ;;  %1524 = vmatprep.subr.bf16.mxu1 %v3406_v36 }
 0x333   :  { %1484 = vmatpush1.bf16.msra.mxu0 %v3408_v41  ;;  %1525 = vmatpush1.bf16.msra.mxu1 %v3410_v38 }
 0x334   :  { %1485 = vmatprep.subr.bf16.mxu0 %v3416_v44  ;;  %1526 = vmatprep.subr.bf16.mxu1 %v3418_v46 }
 0x337   :  { %1486 = vmatpush1.bf16.msra.mxu0 %v3420_v47  ;;  %1527 = vmatpush1.bf16.msra.mxu1 %v3422_v48 }
 0x338   :  { %1487 = vmatprep.subr.bf16.mxu0 %v3428_v49  ;;  %1528 = vmatprep.subr.bf16.mxu1 %v3430_v50 }
 0x33b   :  { %1488 = vmatpush1.bf16.msra.mxu0 %v3432_v51  ;;  %1529 = vmatpush1.bf16.msra.mxu1 %v3434_v52 }
 0x33c   :  { %1489 = vmatprep.subr.bf16.mxu0 %v3440_v2  ;;  %1530 = vmatprep.subr.bf16.mxu1 %v3442_v4 }
 0x33f   :  { %1490 = vmatpush1.bf16.msra.mxu0 %v3444_v5  ;;  %1531 = vmatpush1.bf16.msra.mxu1 %v3446_v6 }
 0x340   :  { %1770 = vmatprep.subr.bf16.mxu0 %v3356_v53  ;;  %1811 = vmatprep.subr.bf16.mxu1 %v3358_v54 }
 0x3e1   :  { %v1214_v7 = vpop.f32.mrf.mxu0  ;;  %v1255_v8 = vpop.f32.mrf.mxu1 }
 0x3e2   :  { %v1215_v9 = vadd.f32 %v1214_v7, %v3257_v40  ;;  %v1256_v19 = vadd.f32 %v1255_v8, %v3262_v45 }
 0x3e3   :  { %v1216_v10 = vpop.f32.mrf.mxu0  ;;  %v1257_v11 = vpop.f32.mrf.mxu1 }
 0x3e4   :  { %v1262_v12 = vmul.f32 0.5, %v1215_v9  ;;  %v1217_v13 = vadd.f32 %v1216_v10, %v3259_v42  ;;  %v1258_v20 = vadd.f32 %v1257_v11, %v3266_v58 }
 0x3e5   :  { %v1218_v14 = vpop.f32.mrf.mxu0  ;;  %v1259_v15 = vpop.f32.mrf.mxu1 }
 0x3e6   :  { %2890 = vtanh.f32 %v1262_v12  ;;  %v1266_v16 = vmul.f32 0.5, %v1217_v13  ;;  %v1271_v21 = vmul.f32 0.5, %v1258_v20 }
 0x3e7   :  { %v1219_v17 = vpop.f32.mrf.mxu0  ;;  %v1260_v18 = vpop.f32.mrf.mxu1 }
 0x3e8   :  { %2892 = vtanh.f32 %v1266_v16 }
 0x3e9   :  { %2894 = vtanh.f32 %v1256_v19 }
 0x3ea   :  { %2896 = vtanh.f32 %v1271_v21 }
 0x3f3   :  { %v2891_v22 = vpop.eup %2890 }
 0x3f4   :  { %v1264_v23 = vadd.f32 1.0, %v2891_v22 }
 0x3f5   :  { %v2893_v24 = vpop.eup %2892 }
 0x3f6   :  { %v1265_v25 = vmul.f32 0.5, %v1264_v23  ;;  %v1268_v26 = vadd.f32 1.0, %v2893_v24  ;;  %v2895_v29 = vpop.eup %2894 }
 0x3f7   :  { %v2897_v43 = vpop.eup %2896 }
 0x3f8   :  { %v1269_v28 = vmul.f32 0.5, %v1268_v26  ;;  %v1276_v31 = vmul.f32 %v2895_v29, %v1265_v25  ;;  %v1273_v7 = vadd.f32 1.0, %v2897_v43 }
 0x3fa   :  { %v1275_v30 = vmul.f32 %v1269_v28, %v3351_v27  ;;  %v1274_v8 = vmul.f32 0.5, %v1273_v7 }
 0x3fc   :  { %v3459_v33 = vadd.f32 %v1276_v31, %v1275_v30 }
 0x3fe   :  { %2898 = vtanh.f32 %v3459_v33 }
 0x40b   :  { %v2899_v9 = vpop.eup %2898 }
 0x40c   :  { %v1279_v10 = vmul.f32 %v2899_v9, %v1274_v8 }
 0x40e   :  { %1281 = vst [vmem:[#allocation11 + $0x18] sm:$0xff] %v1279_v10  ;;  %v1282_v11 = vpack.c.bf16 %v1279_v10, %v1279_v10 }
 0x410   :  { %1508 = vmatmul.mubr.bf16.vlgmr.msra.gmra.mxu0 %v1282_v11  ;;  %1549 = vmatmul.mubr.bf16.vlgmr.msra.gmra.mxu1 %v1282_v11 }
 0x411   :  { %1771 = vmatpush1.bf16.msra.mxu0 %v3360_v55  ;;  %1812 = vmatpush1.bf16.msra.mxu1 %v3362_v56 }
 0x412   :  { %1772 = vmatprep.subr.bf16.mxu0 %v3368_v57  ;;  %1813 = vmatprep.subr.bf16.mxu1 %v3370_v59 }
 0x413   :  { %1802 = vmatprep.mubr.bf16.mxu0 %v3076_v0  ;;  %1843 = vmatprep.mubr.bf16.mxu1 %v3076_v0 }
 0x415   :  { %1773 = vmatpush1.bf16.msra.mxu0 %v3372_v60  ;;  %1814 = vmatpush1.bf16.msra.mxu1 %v3374_v61 }
 0x416   :  { %1774 = vmatprep.subr.bf16.mxu0 %v3380_v62  ;;  %1815 = vmatprep.subr.bf16.mxu1 %v3382_v63 }
 0x419   :  { %1775 = vmatpush1.bf16.msra.mxu0 %v3384_v1  ;;  %1816 = vmatpush1.bf16.msra.mxu1 %v3386_v3 }
 0x41a   :  { %1776 = vmatprep.subr.bf16.mxu0 %v3392_v32  ;;  %1817 = vmatprep.subr.bf16.mxu1 %v3394_v34 }
 0x41d   :  { %1777 = vmatpush1.bf16.msra.mxu0 %v3396_v35  ;;  %1818 = vmatpush1.bf16.msra.mxu1 %v3398_v37 }
 0x41e   :  { %1778 = vmatprep.subr.bf16.mxu0 %v3404_v39  ;;  %1819 = vmatprep.subr.bf16.mxu1 %v3406_v36 }
 0x421   :  { %1779 = vmatpush1.bf16.msra.mxu0 %v3408_v41  ;;  %1820 = vmatpush1.bf16.msra.mxu1 %v3410_v38 }
 0x422   :  { %1780 = vmatprep.subr.bf16.mxu0 %v3416_v44  ;;  %1821 = vmatprep.subr.bf16.mxu1 %v3418_v46 }
 0x425   :  { %1781 = vmatpush1.bf16.msra.mxu0 %v3420_v47  ;;  %1822 = vmatpush1.bf16.msra.mxu1 %v3422_v48 }
 0x426   :  { %1782 = vmatprep.subr.bf16.mxu0 %v3428_v49  ;;  %1823 = vmatprep.subr.bf16.mxu1 %v3430_v50 }
 0x429   :  { %1783 = vmatpush1.bf16.msra.mxu0 %v3432_v51  ;;  %1824 = vmatpush1.bf16.msra.mxu1 %v3434_v52 }
 0x42a   :  { %1784 = vmatprep.subr.bf16.mxu0 %v3440_v2  ;;  %1825 = vmatprep.subr.bf16.mxu1 %v3442_v4 }
 0x42d   :  { %1785 = vmatpush1.bf16.msra.mxu0 %v3444_v5  ;;  %1826 = vmatpush1.bf16.msra.mxu1 %v3446_v6 }
 0x42e   :  { %2065 = vmatprep.subr.bf16.mxu0 %v3356_v53  ;;  %2106 = vmatprep.subr.bf16.mxu1 %v3358_v54 }
 0x4d0   :  { %v1509_v27 = vpop.f32.mrf.mxu0  ;;  %v1550_v12 = vpop.f32.mrf.mxu1 }
 0x4d1   :  { %v1510_v13 = vadd.f32 %v1509_v27, %v3257_v40  ;;  %v1551_v23 = vadd.f32 %v1550_v12, %v3262_v45 }
 0x4d2   :  { %v1511_v14 = vpop.f32.mrf.mxu0  ;;  %v1552_v15 = vpop.f32.mrf.mxu1 }
 0x4d3   :  { %v1557_v16 = vmul.f32 0.5, %v1510_v13  ;;  %v1512_v17 = vadd.f32 %v1511_v14, %v3259_v42  ;;  %v1553_v24 = vadd.f32 %v1552_v15, %v3266_v58 }
 0x4d4   :  { %v1513_v18 = vpop.f32.mrf.mxu0  ;;  %v1554_v19 = vpop.f32.mrf.mxu1 }
 0x4d5   :  { %2900 = vtanh.f32 %v1557_v16  ;;  %v1561_v20 = vmul.f32 0.5, %v1512_v17  ;;  %v1566_v25 = vmul.f32 0.5, %v1553_v24 }
 0x4d6   :  { %v1514_v21 = vpop.f32.mrf.mxu0  ;;  %v1555_v22 = vpop.f32.mrf.mxu1 }
 0x4d7   :  { %2902 = vtanh.f32 %v1561_v20 }
 0x4d8   :  { %2904 = vtanh.f32 %v1551_v23 }
 0x4d9   :  { %2906 = vtanh.f32 %v1566_v25 }
 0x4e2   :  { %v2901_v26 = vpop.eup %2900 }
 0x4e3   :  { %v1559_v28 = vadd.f32 1.0, %v2901_v26 }
 0x4e4   :  { %v2903_v29 = vpop.eup %2902 }
 0x4e5   :  { %v1560_v30 = vmul.f32 0.5, %v1559_v28  ;;  %v1563_v31 = vadd.f32 1.0, %v2903_v29  ;;  %v2905_v7 = vpop.eup %2904 }
 0x4e6   :  { %v2907_v11 = vpop.eup %2906 }
 0x4e7   :  { %v1564_v43 = vmul.f32 0.5, %v1563_v31  ;;  %v1571_v9 = vmul.f32 %v2905_v7, %v1560_v30  ;;  %v1568_v27 = vadd.f32 1.0, %v2907_v11 }
 0x4e9   :  { %v1570_v8 = vmul.f32 %v1564_v43, %v3459_v33  ;;  %v1569_v12 = vmul.f32 0.5, %v1568_v27 }
 0x4eb   :  { %v3501_v10 = vadd.f32 %v1571_v9, %v1570_v8 }
 0x4ed   :  { %2908 = vtanh.f32 %v3501_v10 }
 0x4fa   :  { %v2909_v13 = vpop.eup %2908 }
 0x4fb   :  { %v1574_v14 = vmul.f32 %v2909_v13, %v1569_v12 }
 0x4fd   :  { %1576 = vst [vmem:[#allocation11 + $0x20] sm:$0xff] %v1574_v14  ;;  %v1577_v15 = vpack.c.bf16 %v1574_v14, %v1574_v14 }
 0x4ff   :  { %1803 = vmatmul.mubr.bf16.vlgmr.msra.gmra.mxu0 %v1577_v15  ;;  %1844 = vmatmul.mubr.bf16.vlgmr.msra.gmra.mxu1 %v1577_v15 }
 0x500   :  { %2066 = vmatpush1.bf16.msra.mxu0 %v3360_v55  ;;  %2107 = vmatpush1.bf16.msra.mxu1 %v3362_v56 }
 0x501   :  { %2067 = vmatprep.subr.bf16.mxu0 %v3368_v57  ;;  %2108 = vmatprep.subr.bf16.mxu1 %v3370_v59 }
 0x502   :  { %2097 = vmatprep.mubr.bf16.mxu0 %v3076_v0  ;;  %2138 = vmatprep.mubr.bf16.mxu1 %v3076_v0 }
 0x504   :  { %2068 = vmatpush1.bf16.msra.mxu0 %v3372_v60  ;;  %2109 = vmatpush1.bf16.msra.mxu1 %v3374_v61 }
 0x505   :  { %2069 = vmatprep.subr.bf16.mxu0 %v3380_v62  ;;  %2110 = vmatprep.subr.bf16.mxu1 %v3382_v63 }
 0x508   :  { %2070 = vmatpush1.bf16.msra.mxu0 %v3384_v1  ;;  %2111 = vmatpush1.bf16.msra.mxu1 %v3386_v3 }
 0x509   :  { %2071 = vmatprep.subr.bf16.mxu0 %v3392_v32  ;;  %2112 = vmatprep.subr.bf16.mxu1 %v3394_v34 }
 0x50c   :  { %2072 = vmatpush1.bf16.msra.mxu0 %v3396_v35  ;;  %2113 = vmatpush1.bf16.msra.mxu1 %v3398_v37 }
 0x50d   :  { %2073 = vmatprep.subr.bf16.mxu0 %v3404_v39  ;;  %2114 = vmatprep.subr.bf16.mxu1 %v3406_v36 }
 0x510   :  { %2074 = vmatpush1.bf16.msra.mxu0 %v3408_v41  ;;  %2115 = vmatpush1.bf16.msra.mxu1 %v3410_v38 }
 0x511   :  { %2075 = vmatprep.subr.bf16.mxu0 %v3416_v44  ;;  %2116 = vmatprep.subr.bf16.mxu1 %v3418_v46 }
 0x514   :  { %2076 = vmatpush1.bf16.msra.mxu0 %v3420_v47  ;;  %2117 = vmatpush1.bf16.msra.mxu1 %v3422_v48 }
 0x515   :  { %2077 = vmatprep.subr.bf16.mxu0 %v3428_v49  ;;  %2118 = vmatprep.subr.bf16.mxu1 %v3430_v50 }
 0x518   :  { %2078 = vmatpush1.bf16.msra.mxu0 %v3432_v51  ;;  %2119 = vmatpush1.bf16.msra.mxu1 %v3434_v52 }
 0x519   :  { %2079 = vmatprep.subr.bf16.mxu0 %v3440_v2  ;;  %2120 = vmatprep.subr.bf16.mxu1 %v3442_v4 }
 0x51c   :  { %2080 = vmatpush1.bf16.msra.mxu0 %v3444_v5  ;;  %2121 = vmatpush1.bf16.msra.mxu1 %v3446_v6 }
 0x51d   :  { %2360 = vmatprep.subr.bf16.mxu0 %v3356_v53  ;;  %2401 = vmatprep.subr.bf16.mxu1 %v3358_v54 }
 0x5bf   :  { %v1804_v33 = vpop.f32.mrf.mxu0  ;;  %v1845_v16 = vpop.f32.mrf.mxu1 }
 0x5c0   :  { %v1805_v17 = vadd.f32 %v1804_v33, %v3257_v40  ;;  %v1846_v28 = vadd.f32 %v1845_v16, %v3262_v45 }
 0x5c1   :  { %v1806_v18 = vpop.f32.mrf.mxu0  ;;  %v1847_v19 = vpop.f32.mrf.mxu1 }
 0x5c2   :  { %v1852_v20 = vmul.f32 0.5, %v1805_v17  ;;  %v1807_v21 = vadd.f32 %v1806_v18, %v3259_v42  ;;  %v1848_v53 = vadd.f32 %v1847_v19, %v3266_v58 }
 0x5c3   :  { %v1808_v22 = vpop.f32.mrf.mxu0  ;;  %v1849_v23 = vpop.f32.mrf.mxu1 }
 0x5c4   :  { %2910 = vtanh.f32 %v1852_v20  ;;  %v1856_v24 = vmul.f32 0.5, %v1807_v21  ;;  %v1861_v54 = vmul.f32 0.5, %v1848_v53 }
 0x5c5   :  { %v1809_v25 = vpop.f32.mrf.mxu0  ;;  %v1850_v26 = vpop.f32.mrf.mxu1 }
 0x5c6   :  { %2912 = vtanh.f32 %v1856_v24 }
 0x5c7   :  { %2914 = vtanh.f32 %v1846_v28 }
 0x5c8   :  { %2916 = vtanh.f32 %v1861_v54 }
 0x5d1   :  { %v2911_v29 = vpop.eup %2910 }
 0x5d2   :  { %v1854_v30 = vadd.f32 1.0, %v2911_v29 }
 0x5d3   :  { %v2913_v31 = vpop.eup %2912 }
 0x5d4   :  { %v1855_v43 = vmul.f32 0.5, %v1854_v30  ;;  %v1858_v7 = vadd.f32 1.0, %v2913_v31  ;;  %v2915_v9 = vpop.eup %2914 }
 0x5d5   :  { %v2917_v13 = vpop.eup %2916 }
 0x5d6   :  { %v1859_v8 = vmul.f32 0.5, %v1858_v7  ;;  %v1866_v27 = vmul.f32 %v2915_v9, %v1855_v43  ;;  %v1863_v14 = vadd.f32 1.0, %v2917_v13 }
 0x5d8   :  { %v1865_v11 = vmul.f32 %v1859_v8, %v3501_v10  ;;  %v1864_v15 = vmul.f32 0.5, %v1863_v14 }
 0x5da   :  { %v3543_v12 = vadd.f32 %v1866_v27, %v1865_v11 }
 0x5dc   :  { %2918 = vtanh.f32 %v3543_v12 }
 0x5e9   :  { %v2919_v33 = vpop.eup %2918 }
 0x5ea   :  { %v1869_v16 = vmul.f32 %v2919_v33, %v1864_v15 }
 0x5ec   :  { %1871 = vst [vmem:[#allocation11 + $0x28] sm:$0xff] %v1869_v16  ;;  %v1872_v17 = vpack.c.bf16 %v1869_v16, %v1869_v16 }
 0x5ee   :  { %2098 = vmatmul.mubr.bf16.vlgmr.msra.gmra.mxu0 %v1872_v17  ;;  %2139 = vmatmul.mubr.bf16.vlgmr.msra.gmra.mxu1 %v1872_v17 }
 0x5ef   :  { %2361 = vmatpush1.bf16.msra.mxu0 %v3360_v55  ;;  %2402 = vmatpush1.bf16.msra.mxu1 %v3362_v56 }
 0x5f0   :  { %2362 = vmatprep.subr.bf16.mxu0 %v3368_v57  ;;  %2403 = vmatprep.subr.bf16.mxu1 %v3370_v59 }
 0x5f1   :  { %2392 = vmatprep.mubr.bf16.mxu0 %v3076_v0  ;;  %2433 = vmatprep.mubr.bf16.mxu1 %v3076_v0 }
 0x5f3   :  { %2363 = vmatpush1.bf16.msra.mxu0 %v3372_v60  ;;  %2404 = vmatpush1.bf16.msra.mxu1 %v3374_v61 }
 0x5f4   :  { %2364 = vmatprep.subr.bf16.mxu0 %v3380_v62  ;;  %2405 = vmatprep.subr.bf16.mxu1 %v3382_v63 }
 0x5f7   :  { %2365 = vmatpush1.bf16.msra.mxu0 %v3384_v1  ;;  %2406 = vmatpush1.bf16.msra.mxu1 %v3386_v3 }
 0x5f8   :  { %2366 = vmatprep.subr.bf16.mxu0 %v3392_v32  ;;  %2407 = vmatprep.subr.bf16.mxu1 %v3394_v34 }
 0x5fb   :  { %2367 = vmatpush1.bf16.msra.mxu0 %v3396_v35  ;;  %2408 = vmatpush1.bf16.msra.mxu1 %v3398_v37 }
 0x5fc   :  { %2368 = vmatprep.subr.bf16.mxu0 %v3404_v39  ;;  %2409 = vmatprep.subr.bf16.mxu1 %v3406_v36 }
 0x5ff   :  { %2369 = vmatpush1.bf16.msra.mxu0 %v3408_v41  ;;  %2410 = vmatpush1.bf16.msra.mxu1 %v3410_v38 }
 0x600   :  { %2370 = vmatprep.subr.bf16.mxu0 %v3416_v44  ;;  %2411 = vmatprep.subr.bf16.mxu1 %v3418_v46 }
 0x603   :  { %2371 = vmatpush1.bf16.msra.mxu0 %v3420_v47  ;;  %2412 = vmatpush1.bf16.msra.mxu1 %v3422_v48 }
 0x604   :  { %2372 = vmatprep.subr.bf16.mxu0 %v3428_v49  ;;  %2413 = vmatprep.subr.bf16.mxu1 %v3430_v50 }
 0x607   :  { %2373 = vmatpush1.bf16.msra.mxu0 %v3432_v51  ;;  %2414 = vmatpush1.bf16.msra.mxu1 %v3434_v52 }
 0x608   :  { %2374 = vmatprep.subr.bf16.mxu0 %v3440_v2  ;;  %2415 = vmatprep.subr.bf16.mxu1 %v3442_v4 }
 0x60b   :  { %2375 = vmatpush1.bf16.msra.mxu0 %v3444_v5  ;;  %2416 = vmatpush1.bf16.msra.mxu1 %v3446_v6 }
 0x6ae   :  { %v2099_v0 = vpop.f32.mrf.mxu0  ;;  %v2140_v55 = vpop.f32.mrf.mxu1 }
 0x6af   :  { %v2100_v56 = vadd.f32 %v2099_v0, %v3257_v40  ;;  %v2141_v34 = vadd.f32 %v2140_v55, %v3262_v45 }
 0x6b0   :  { %v2101_v57 = vpop.f32.mrf.mxu0  ;;  %v2142_v59 = vpop.f32.mrf.mxu1 }
 0x6b1   :  { %v2147_v60 = vmul.f32 0.5, %v2100_v56  ;;  %v2102_v61 = vadd.f32 %v2101_v57, %v3259_v42  ;;  %v2143_v35 = vadd.f32 %v2142_v59, %v3266_v58 }
 0x6b2   :  { %v2103_v62 = vpop.f32.mrf.mxu0  ;;  %v2144_v63 = vpop.f32.mrf.mxu1 }
 0x6b3   :  { %2920 = vtanh.f32 %v2147_v60  ;;  %v2151_v1 = vmul.f32 0.5, %v2102_v61  ;;  %v2156_v37 = vmul.f32 0.5, %v2143_v35 }
 0x6b4   :  { %v2104_v3 = vpop.f32.mrf.mxu0  ;;  %v2145_v32 = vpop.f32.mrf.mxu1 }
 0x6b5   :  { %2922 = vtanh.f32 %v2151_v1 }
 0x6b6   :  { %2924 = vtanh.f32 %v2141_v34 }
 0x6b7   :  { %2926 = vtanh.f32 %v2156_v37 }
 0x6c0   :  { %v2921_v39 = vpop.eup %2920 }
 0x6c1   :  { %v2149_v36 = vadd.f32 1.0, %v2921_v39 }
 0x6c2   :  { %v2923_v41 = vpop.eup %2922 }
 0x6c3   :  { %v2150_v38 = vmul.f32 0.5, %v2149_v36  ;;  %v2153_v44 = vadd.f32 1.0, %v2923_v41  ;;  %v2925_v47 = vpop.eup %2924 }
 0x6c4   :  { %v2927_v51 = vpop.eup %2926 }
 0x6c5   :  { %v2154_v46 = vmul.f32 0.5, %v2153_v44  ;;  %v2161_v49 = vmul.f32 %v2925_v47, %v2150_v38  ;;  %v2158_v52 = vadd.f32 1.0, %v2927_v51 }
 0x6c7   :  { %v2160_v48 = vmul.f32 %v2154_v46, %v3543_v12  ;;  %v2159_v2 = vmul.f32 0.5, %v2158_v52 }
 0x6c9   :  { %v2162_v50 = vadd.f32 %v2161_v49, %v2160_v48 }
 0x6cb   :  { %2928 = vtanh.f32 %v2162_v50 }
 0x6d8   :  { %v2929_v4 = vpop.eup %2928 }
 0x6d9   :  { %v2164_v5 = vmul.f32 %v2929_v4, %v2159_v2 }
 0x6db   :  { %2166 = vst [vmem:[#allocation11 + $0x30] sm:$0xff] %v2164_v5  ;;  %v2167_v6 = vpack.c.bf16 %v2164_v5, %v2164_v5 }
 0x6dd   :  { %2393 = vmatmul.mubr.bf16.vlgmr.msra.gmra.mxu0 %v2167_v6  ;;  %2434 = vmatmul.mubr.bf16.vlgmr.msra.gmra.mxu1 %v2167_v6 }
 0x79d   :  { %v2394_v10 = vpop.f32.mrf.mxu0  ;;  %v2435_v18 = vpop.f32.mrf.mxu1 }
 0x79e   :  { %v2395_v19 = vadd.f32 %v2394_v10, %v3257_v40  ;;  %v2436_v54 = vadd.f32 %v2435_v18, %v3262_v45 }
 0x79f   :  { %v2396_v20 = vpop.f32.mrf.mxu0  ;;  %v2437_v21 = vpop.f32.mrf.mxu1 }
 0x7a0   :  { %v2442_v22 = vmul.f32 0.5, %v2395_v19  ;;  %v2397_v23 = vadd.f32 %v2396_v20, %v3259_v42  ;;  %v2438_v29 = vadd.f32 %v2437_v21, %v3266_v58 }
 0x7a1   :  { %v2398_v24 = vpop.f32.mrf.mxu0  ;;  %v2439_v25 = vpop.f32.mrf.mxu1 }
 0x7a2   :  { %2930 = vtanh.f32 %v2442_v22  ;;  %v2446_v26 = vmul.f32 0.5, %v2397_v23  ;;  %v2451_v30 = vmul.f32 0.5, %v2438_v29 }
 0x7a3   :  { %v2399_v28 = vpop.f32.mrf.mxu0  ;;  %v2440_v53 = vpop.f32.mrf.mxu1 }
 0x7a4   :  { %2932 = vtanh.f32 %v2446_v26 }
 0x7a5   :  { %2934 = vtanh.f32 %v2436_v54 }
 0x7a6   :  { %2936 = vtanh.f32 %v2451_v30 }
 0x7af   :  { %v2931_v31 = vpop.eup %2930 }
 0x7b0   :  { %v2444_v40 = vadd.f32 1.0, %v2931_v31 }
 0x7b1   :  { %v2933_v43 = vpop.eup %2932 }
 0x7b2   :  { %v2445_v7 = vmul.f32 0.5, %v2444_v40  ;;  %v2448_v8 = vadd.f32 1.0, %v2933_v43  ;;  %v2935_v9 = vpop.eup %2934 }
 0x7b4   :  { %v2449_v42 = vmul.f32 0.5, %v2448_v8  ;;  %v2456_v27 = vmul.f32 %v2935_v9, %v2445_v7 }
 0x7b6   :  { %v2455_v11 = vmul.f32 %v2449_v42, %v2162_v50 }
 0x7b8   :  { %v2457_v12 = vadd.f32 %v2456_v27, %v2455_v11 }
 0x7ba   :  { %2938 = vtanh.f32 %v2457_v12  ;;  %2463 = vst [vmem:[#allocation12] sm:$0xff] %v2457_v12 }
 0x7bb   :  { %3031 = shalt.err (!%p3028_p10)
}
 0x7bc   :  { %2485 = dma.vmem_to_hbm [thread:$0]  %s2483_s3, 128, %s3598_s5, [#allocation13]   ;;  %v2937_v45 = vpop.eup %2936 }
 0x7bd   :  { %v2453_v58 = vadd.f32 1.0, %v2937_v45  ;;  %s3078_s16 = smov [#allocation11]  }
 0x7be   :  { %s2469_s17 = sshll.u32 %s3078_s16, 4  ;;  %s2470_s17 = int_to_ptr.vmem [resolvable:$true] %s2469_s17 }
 0x7bf   :  { %v2454_v13 = vmul.f32 0.5, %v2453_v58  ;;  %s3040_s18 = scalar_lea.vmem %s2470_s17, 1024  ;;  %p3045_p12 = scmp.lt.s32.totalorder %s2470_s17, %s2470_s17 }
 0x7c0   :  { %p3041_p11 = scmp.ne.s32.totalorder %s2470_s17, %s3040_s18  ;;  %p3046_p13 = scmp.lt.s32.totalorder %s3040_s18, %s3040_s18 }
 0x7c2   :  { %p3047_p0 = por %p3046_p13, %p3045_p12 }
 0x7c4   :  { %p3048_p1 = pnand %p3047_p0, %p3041_p11 }
 0x7c7   :  { %v2939_v14 = vpop.eup %2938 }
 0x7c8   :  { %v2459_v15 = vmul.f32 %v2939_v14, %v2454_v13 }
 0x7ca   :  { %2461 = vst [vmem:[#allocation11 + $0x38] sm:$0xff] %v2459_v15 }
 0x7cb   :  { %3051 = shalt.err (!%p3048_p1)
}
 0x7cc   :  { %s3079_s19 = smov 128   ;;  %s3080_s20 = smov 8  }
 0x7cd   :  { %2475 = dma.vmem_to_hbm [thread:$0]  %s2470_s17, 1024, %s3597_s4, [#allocation5], %s3079_s19, %s3079_s19, %s3080_s20  }
 0x7ce   :  { %3066 = dma.done.wait [#allocation5], 1024  }
 0x7cf   :  { %3067 = vsyncadd [#allocation5], 4294966272 }
 0x7d0   :  { %3068 = dma.done.wait [#allocation13], 128  }
 0x7d1   :  { %3069 = vsyncadd [#allocation13], 4294967168 }
 0x7d2   :  { %2492 = vsyncpa [#allocation4], 1 }
 0x7d3   :  { %2493 = vsyncpa [#allocation7], 1 }
 0x7d4   :  { %2494 = vsyncpa [#allocation10], 1 }
 0x7d5   :  { %2495 = vsyncpa [#allocation5], 1 }
 0x7d6   :  { %2496 = vsyncpa [#allocation13], 1 }

</bundles_post_ra>
